<compile_context>
chip_gen: v7x
topology: tpu7x:2x2x1
jax: 0.10.0
libtpu: 0.0.40
codegen_flags: <defaults>
</compile_context>

<pallas_src>
import functools

import jax
import jax.numpy as jnp
import numpy as np
from jax import lax
from jax.experimental import pallas as pl
from jax.experimental.pallas import tpu as pltpu


def _round_up(x, m):
    return (x + m - 1) // m * m


_VMEM_LIMIT = 32 * 1024 * 1024   # safe on v5e/v6e (128 MiB phys) and v7x (64 MiB)
_SUBLANE_PAD = 16                # bf16 native second-minor tile


# ----------------------------------------------------------------------------
# XLA-level space-to-depth (pure layout transform, no data amplification).
# Element [b, a, c, (di*s+dj)*C + ch] = x[b, a*s+di, c*s+dj, ch].
# ----------------------------------------------------------------------------
def space_to_depth(x, s):
    B, H, W, C = x.shape
    assert H % s == 0 and W % s == 0
    x = x.reshape(B, H // s, s, W // s, s, C)
    x = jnp.transpose(x, (0, 1, 3, 2, 4, 5))
    return x.reshape(B, H // s, W // s, s * s * C)


# ----------------------------------------------------------------------------
# In-kernel im2col (stride-1, VMEM patch scratch) + bf16 MXU matmul + bias/ReLU
# ----------------------------------------------------------------------------
def _im2col_matmul(read_tap, w_ref, b_ref, p_ref, *, kk, Ho, Wo, Wop, Cin):
    K = kk * kk * Cin
    O = w_ref.shape[1]
    if Wop > Wo:                                   # keep padded rows defined
        p_ref[...] = jnp.zeros(p_ref.shape, p_ref.dtype)
    for i in range(kk):
        for j in range(kk):
            t = i * kk + j
            p_ref[:, :Wo, t * Cin:(t + 1) * Cin] = read_tap(i, j)
    patches = p_ref[...].reshape(Ho * Wop, K)      # tile-aligned re-blocking
    acc = jnp.dot(patches, w_ref[...], preferred_element_type=jnp.float32)
    acc = jnp.maximum(acc + b_ref[...], 0.0)
    acc = acc.reshape(Ho, Wop, O)[:, :Wo, :]
    return acc.astype(jnp.bfloat16)


# ----------------------------------------------------------------------------
# Pallas kernel 1: conv1 on the space-to-depth(4) input (kk=2, stride 1)
# ----------------------------------------------------------------------------
def _conv1_kernel(x_ref, w_ref, b_ref, o_ref, p_ref, *, Ho, Wo, Wop, Cin):
    read = lambda i, j: x_ref[0, i:i + Ho, j:j + Wo, :]
    o_ref[0] = _im2col_matmul(read, w_ref, b_ref, p_ref,
                              kk=2, Ho=Ho, Wo=Wo, Wop=Wop, Cin=Cin)


def conv1_s2d(x, w, b):
    """x: (B, H/4, W/4, 16*C) bf16; w: (4*16*C, 32) bf16; b: (1, 32) f32."""
    B, H4, W4, C1 = x.shape
    O = w.shape[1]
    Ho, Wo = H4 - 1, W4 - 1
    Wop = _round_up(Wo, _SUBLANE_PAD)
    kern = functools.partial(_conv1_kernel, Ho=Ho, Wo=Wo, Wop=Wop, Cin=C1)
    return pl.pallas_call(
        kern,
        out_shape=jax.ShapeDtypeStruct((B, Ho, Wo, O), jnp.bfloat16),
        grid=(B,),
        in_specs=[pl.BlockSpec((1, H4, W4, C1), lambda bi: (bi, 0, 0, 0)),
                  pl.BlockSpec(w.shape, lambda bi: (0, 0)),
                  pl.BlockSpec(b.shape, lambda bi: (0, 0))],
        out_specs=pl.BlockSpec((1, Ho, Wo, O), lambda bi: (bi, 0, 0, 0)),
        scratch_shapes=[pltpu.VMEM((Ho, Wop, 4 * C1), jnp.bfloat16)],
        compiler_params=pltpu.CompilerParams(
            dimension_semantics=("parallel",), vmem_limit_bytes=_VMEM_LIMIT),
    )(x, w, b)


# ----------------------------------------------------------------------------
# Pallas kernel 2: conv2 (on space-to-depth(2) input, kk=2) fused with conv3
# (kk=3).  h2 lives only in VMEM scratch.
# ----------------------------------------------------------------------------
def _conv23_kernel(x_ref, w2_ref, b2_ref, w3_ref, b3_ref, o_ref,
                   p2_ref, h2_ref, p3_ref, *,
                   Ho2, Wo2, Wo2p, C2, Ho3, Wo3, Wo3p, C3):
    read2 = lambda i, j: x_ref[0, i:i + Ho2, j:j + Wo2, :]
    h2_ref[...] = _im2col_matmul(read2, w2_ref, b2_ref, p2_ref,
                                 kk=2, Ho=Ho2, Wo=Wo2, Wop=Wo2p, Cin=C2)
    read3 = lambda i, j: h2_ref[i:i + Ho3, j:j + Wo3, :]
    o_ref[0] = _im2col_matmul(read3, w3_ref, b3_ref, p3_ref,
                              kk=3, Ho=Ho3, Wo=Wo3, Wop=Wo3p, Cin=C3)


def conv23(x, w2, b2, w3, b3):
    """x: (B, Ho1/2, Wo1/2, 128) bf16 -> (B, Ho3, Wo3, 64) bf16."""
    B, H2s, W2s, C2 = x.shape
    O2, O3 = w2.shape[1], w3.shape[1]
    Ho2, Wo2 = H2s - 1, W2s - 1
    Ho3, Wo3 = Ho2 - 2, Wo2 - 2
    Wo2p = _round_up(Wo2, _SUBLANE_PAD)
    Wo3p = _round_up(Wo3, _SUBLANE_PAD)
    kern = functools.partial(_conv23_kernel, Ho2=Ho2, Wo2=Wo2, Wo2p=Wo2p, C2=C2,
                             Ho3=Ho3, Wo3=Wo3, Wo3p=Wo3p, C3=O2)
    return pl.pallas_call(
        kern,
        out_shape=jax.ShapeDtypeStruct((B, Ho3, Wo3, O3), jnp.bfloat16),
        grid=(B,),
        in_specs=[pl.BlockSpec((1, H2s, W2s, C2), lambda bi: (bi, 0, 0, 0)),
                  pl.BlockSpec(w2.shape, lambda bi: (0, 0)),
                  pl.BlockSpec(b2.shape, lambda bi: (0, 0)),
                  pl.BlockSpec(w3.shape, lambda bi: (0, 0)),
                  pl.BlockSpec(b3.shape, lambda bi: (0, 0))],
        out_specs=pl.BlockSpec((1, Ho3, Wo3, O3), lambda bi: (bi, 0, 0, 0)),
        scratch_shapes=[pltpu.VMEM((Ho2, Wo2p, 4 * C2), jnp.bfloat16),
                        pltpu.VMEM((Ho2, Wo2, O2), jnp.bfloat16),
                        pltpu.VMEM((Ho3, Wo3p, 9 * O2), jnp.bfloat16)],
        compiler_params=pltpu.CompilerParams(
            dimension_semantics=("parallel",), vmem_limit_bytes=_VMEM_LIMIT),
    )(x, w2, b2, w3, b3)


# ----------------------------------------------------------------------------
# Pallas kernel 3: fused FC head  q = relu(X @ W1 + b1) @ W2 + b2
# (actions padded to 128 lanes -> lane-dense stores; sliced outside)
# ----------------------------------------------------------------------------
def _fc_head_kernel(x_ref, w1_ref, b1_ref, w2_ref, b2_ref, o_ref):
    h = jnp.dot(x_ref[...], w1_ref[...], preferred_element_type=jnp.float32)
    h = jnp.maximum(h + b1_ref[...], 0.0)
    q = jnp.dot(h.astype(w2_ref.dtype), w2_ref[...],
                preferred_element_type=jnp.float32)
    o_ref[...] = (q + b2_ref[...]).astype(o_ref.dtype)


def fc_head(x, w1, b1, w2, b2, *, block_m: int = 128):
    M, F = x.shape
    F2, H = w1.shape
    H2, Np = w2.shape
    assert F == F2 and H == H2
    n_tiles = max(1, -(-M // block_m))              # balanced tiles, no 2x pad
    tm = _round_up(-(-M // n_tiles), 16)
    Mp = n_tiles * tm
    if Mp != M:
        x = jnp.pad(x, ((0, Mp - M), (0, 0)))
    out = pl.pallas_call(
        _fc_head_kernel,
        out_shape=jax.ShapeDtypeStruct((Mp, Np), jnp.float32),
        grid=(n_tiles,),
        in_specs=[pl.BlockSpec((tm, F), lambda i: (i, 0)),
                  pl.BlockSpec((F, H), lambda i: (0, 0)),
                  pl.BlockSpec((1, H), lambda i: (0, 0)),
                  pl.BlockSpec((H, Np), lambda i: (0, 0)),
                  pl.BlockSpec((1, Np), lambda i: (0, 0))],
        out_specs=pl.BlockSpec((tm, Np), lambda i: (i, 0)),
        compiler_params=pltpu.CompilerParams(
            dimension_semantics=("parallel",), vmem_limit_bytes=_VMEM_LIMIT),
    )(x, w1, b1, w2, b2)
    return out[:M]


# ----------------------------------------------------------------------------
# Parameter init (torch layout, deterministic, PyTorch-like uniform)
# ----------------------------------------------------------------------------
def _uniform(key, shape, fan_in):
    bound = 1.0 / np.sqrt(fan_in)
    return jax.random.uniform(key, shape, jnp.float32, -bound, bound)


def init_params(key, in_channels, num_actions, feat_size):
    ks = jax.random.split(key, 10)
    p = {}
    p["w1"] = _uniform(ks[0], (32, in_channels, 8, 8), in_channels * 8 * 8)
    p["b1"] = _uniform(ks[1], (32,), in_channels * 8 * 8)
    p["w2"] = _uniform(ks[2], (64, 32, 4, 4), 32 * 4 * 4)
    p["b2"] = _uniform(ks[3], (64,), 32 * 4 * 4)
    p["w3"] = _uniform(ks[4], (64, 64, 3, 3), 64 * 3 * 3)
    p["b3"] = _uniform(ks[5], (64,), 64 * 3 * 3)
    p["wf1"] = _uniform(ks[6], (feat_size, 512), feat_size)  # (F,512) = torch (512,F).T
    p["bf1"] = _uniform(ks[7], (512,), feat_size)
    p["wf2"] = _uniform(ks[8], (512, num_actions), 512)
    p["bf2"] = _uniform(ks[9], (num_actions,), 512)
    return p


# ----------------------------------------------------------------------------
# One-time parameter preparation (layout + dtype), outside the forward pass.
# ----------------------------------------------------------------------------
def _prep_conv_s2d(w, b, s):
    """torch OIHW (O, Ci, k, k), stride s (k % s == 0) -> ((k/s)^2*s^2*Ci, O)
    with rows ordered (tap I*kk+J, then s2d-channel (di*s+dj)*Ci + c)."""
    O, Ci, k, _ = w.shape
    kk = k // s
    wt = jnp.transpose(w, (2, 3, 1, 0))              # (u, v, c, o)
    wt = wt.reshape(kk, s, kk, s, Ci, O)             # (I, di, J, dj, c, o)
    wt = jnp.transpose(wt, (0, 2, 1, 3, 4, 5))       # (I, J, di, dj, c, o)
    wt = wt.reshape(kk * kk * s * s * Ci, O)
    return wt.astype(jnp.bfloat16), b.reshape(1, O).astype(jnp.float32)


def prepare_params(p, in_shape, num_actions):
    C, H, W = in_shape
    h1 = (H - 8) // 4 + 1
    h2 = (h1 - 4) // 2 + 1
    h3 = (h2 - 3) // 1 + 1
    w1_ = (W - 8) // 4 + 1
    w2_ = (w1_ - 4) // 2 + 1
    w3_ = (w2_ - 3) // 1 + 1

    q = {}
    q["w1"], q["b1"] = _prep_conv_s2d(p["w1"], p["b1"], 4)
    q["w2"], q["b2"] = _prep_conv_s2d(p["w2"], p["b2"], 2)
    q["w3"], q["b3"] = _prep_conv_s2d(p["w3"], p["b3"], 1)

    # fc1 rows: permute from torch NCHW-flatten order to our NHWC-flatten order
    wf1 = p["wf1"].reshape(64, h3, w3_, 512).transpose(1, 2, 0, 3).reshape(-1, 512)
    q["wf1"] = wf1.astype(jnp.bfloat16)
    q["bf1"] = p["bf1"].reshape(1, 512).astype(jnp.float32)

    # fc2: pad num_actions up to 128 lanes (lane-dense store), slice after
    Np = _round_up(max(num_actions, 1), 128)
    wf2 = jnp.zeros((512, Np), jnp.float32).at[:, :num_actions].set(p["wf2"])
    bf2 = jnp.zeros((1, Np), jnp.float32).at[:, :num_actions].set(
        p["bf2"].reshape(1, -1))
    q["wf2"] = wf2.astype(jnp.bfloat16)
    q["bf2"] = bf2
    return q


# ----------------------------------------------------------------------------
# Forward pass (CnnDQN.forward).  External input is NCHW f32 (PyTorch layout).
# ----------------------------------------------------------------------------
def cnn_dqn_forward(prep, x, *, num_actions):
    B, C, H, W = x.shape
    # TODO(synk): fold the NCHW->NHWC + bf16 cast + space-to-depth into the
    #             conv1 kernel load path, and fuse conv1 into the conv23
    #             kernel for single-pallas_call B=1 inference.
    assert H % 4 == 0 and W % 4 == 0, "spatial dims must be multiples of 4"
    x = jnp.transpose(x, (0, 2, 3, 1)).astype(jnp.bfloat16)   # NCHW -> NHWC
    x = space_to_depth(x, 4)                                   # (B, H/4, W/4, 16C)
    h1 = conv1_s2d(x, prep["w1"], prep["b1"])                  # (B, Ho1, Wo1, 32)
    assert h1.shape[1] % 2 == 0 and h1.shape[2] % 2 == 0
    h1 = space_to_depth(h1, 2)                                 # (B, Ho1/2, Wo1/2, 128)
    h3 = conv23(h1, prep["w2"], prep["b2"], prep["w3"], prep["b3"])
    feat = h3.reshape(B, -1)                                   # NHWC flatten
    q = fc_head(feat, prep["wf1"], prep["bf1"], prep["wf2"], prep["bf2"])
    return q[:, :num_actions]


# ----------------------------------------------------------------------------
# Pure-JAX f32 reference (torch-layout params) for correctness checking
# ----------------------------------------------------------------------------
def _ref_forward(params, x):
    dn = ("NCHW", "OIHW", "NCHW")

    def conv(x, w, b, s):
        y = lax.conv_general_dilated(x, w, (s, s), "VALID", dimension_numbers=dn)
        return jnp.maximum(y + b[None, :, None, None], 0.0)

    h = conv(x, params["w1"], params["b1"], 4)
    h = conv(h, params["w2"], params["b2"], 2)
    h = conv(h, params["w3"], params["b3"], 1)
    h = h.reshape(h.shape[0], -1)
    h = jnp.maximum(h @ params["wf1"] + params["bf1"], 0.0)
    return h @ params["wf2"] + params["bf2"]


if __name__ == "__main__":
    # Small shapes consistent with the module: batch=2, 4 stacked frames,
    # 36x36 spatial (smallest multiple-of-4 size keeping all three VALID
    # convs legal: 36 -> 8 -> 3 -> 1), Pong-like num_actions=6.
    B, C, H, W = 2, 4, 36, 36
    num_actions = 6

    h1 = (H - 8) // 4 + 1
    h2 = (h1 - 4) // 2 + 1
    h3 = (h2 - 3) // 1 + 1
    feat_size = 64 * h3 * h3  # = 64

    key = jax.random.PRNGKey(0)
    k_x, k_p = jax.random.split(key)
    x = jax.random.uniform(k_x, (B, C, H, W), jnp.float32)
    params = init_params(k_p, C, num_actions, feat_size)
    prep = prepare_params(params, (C, H, W), num_actions)

    fwd = jax.jit(functools.partial(cnn_dqn_forward, num_actions=num_actions))
    q = fwd(prep, x)
    q = jax.block_until_ready(q)
    assert q.shape == (B, num_actions), q.shape

    # bf16 MXU operands + bf16 intermediate activations -> relaxed tolerance
    q_ref = _ref_forward(params, x)
    np.testing.assert_allclose(np.asarray(q), np.asarray(q_ref), rtol=3e-2, atol=3e-2)

    print("KERNEL_OK")
</pallas_src>

<mosaic_0001>
module attributes {stable_mosaic.version = 11 : i64} {
  func.func @_conv1_kernel(%arg0: i32, %arg1: memref<1x9x9x64xbf16, #tpu.memory_space<vmem>>, %arg2: memref<256x32xbf16, #tpu.memory_space<vmem>>, %arg3: memref<1x32xf32, #tpu.memory_space<vmem>>, %arg4: memref<1x8x8x32xbf16, #tpu.memory_space<vmem>>, %arg5: memref<8x16x256xbf16, #tpu.memory_space<vmem>>) attributes {dimension_semantics = [#tpu.dimension_semantics<parallel>], iteration_bounds = array<i64: 2>, scalar_prefetch = 0 : i64, scratch_operands = 1 : i64, tpu.core_type = #tpu.core_type<tc>, window_params = [{transform_indices = @transform_0, window_bounds = array<i64: 1, 9, 9, 64>}, {pipeline_mode = #tpu.pipeline_mode<synchronous>, transform_indices = @transform_1, window_bounds = array<i64: 256, 32>}, {pipeline_mode = #tpu.pipeline_mode<synchronous>, transform_indices = @transform_2, window_bounds = array<i64: 1, 32>}, {transform_indices = @transform_3, window_bounds = array<i64: 1, 8, 8, 32>}]} {
    %cst = arith.constant 0.000000e+00 : bf16
    %0 = vector.broadcast %cst : bf16 to vector<8x16x256xbf16>
    %c0 = arith.constant 0 : index
    %c0_0 = arith.constant 0 : index
    %c0_1 = arith.constant 0 : index
    %1 = vector.load %arg5[%c0, %c0_0, %c0_1] : memref<8x16x256xbf16, #tpu.memory_space<vmem>>, vector<8x16x256xbf16>
    tpu.vector_store %arg5[%c0, %c0_0, %c0_1], %0 {strides = array<i32>} : memref<8x16x256xbf16, #tpu.memory_space<vmem>>, vector<8x16x256xbf16>,
    %c0_2 = arith.constant 0 : index
    %c0_3 = arith.constant 0 : index
    %c0_4 = arith.constant 0 : index
    %c0_5 = arith.constant 0 : index
    %2 = vector.load %arg1[%c0_2, %c0_3, %c0_4, %c0_5] : memref<1x9x9x64xbf16, #tpu.memory_space<vmem>>, vector<1x8x8x64xbf16>
    %3 = vector.shape_cast %2 : vector<1x8x8x64xbf16> to vector<8x8x64xbf16>
    %c0_6 = arith.constant 0 : index
    %c0_7 = arith.constant 0 : index
    %c0_8 = arith.constant 0 : index
    %4 = vector.load %arg5[%c0_6, %c0_7, %c0_8] : memref<8x16x256xbf16, #tpu.memory_space<vmem>>, vector<8x8x64xbf16>
    tpu.vector_store %arg5[%c0_6, %c0_7, %c0_8], %3 {strides = array<i32>} : memref<8x16x256xbf16, #tpu.memory_space<vmem>>, vector<8x8x64xbf16>,
    %c0_9 = arith.constant 0 : index
    %c0_10 = arith.constant 0 : index
    %c1 = arith.constant 1 : index
    %c0_11 = arith.constant 0 : index
    %5 = vector.load %arg1[%c0_9, %c0_10, %c1, %c0_11] : memref<1x9x9x64xbf16, #tpu.memory_space<vmem>>, vector<1x8x8x64xbf16>
    %6 = vector.shape_cast %5 : vector<1x8x8x64xbf16> to vector<8x8x64xbf16>
    %c0_12 = arith.constant 0 : index
    %c0_13 = arith.constant 0 : index
    %c64 = arith.constant 64 : index
    %7 = vector.load %arg5[%c0_12, %c0_13, %c64] : memref<8x16x256xbf16, #tpu.memory_space<vmem>>, vector<8x8x64xbf16>
    tpu.vector_store %arg5[%c0_12, %c0_13, %c64], %6 {strides = array<i32>} : memref<8x16x256xbf16, #tpu.memory_space<vmem>>, vector<8x8x64xbf16>,
    %c0_14 = arith.constant 0 : index
    %c1_15 = arith.constant 1 : index
    %c0_16 = arith.constant 0 : index
    %c0_17 = arith.constant 0 : index
    %8 = vector.load %arg1[%c0_14, %c1_15, %c0_16, %c0_17] : memref<1x9x9x64xbf16, #tpu.memory_space<vmem>>, vector<1x8x8x64xbf16>
    %9 = vector.shape_cast %8 : vector<1x8x8x64xbf16> to vector<8x8x64xbf16>
    %c0_18 = arith.constant 0 : index
    %c0_19 = arith.constant 0 : index
    %c128 = arith.constant 128 : index
    %10 = vector.load %arg5[%c0_18, %c0_19, %c128] : memref<8x16x256xbf16, #tpu.memory_space<vmem>>, vector<8x8x64xbf16>
    tpu.vector_store %arg5[%c0_18, %c0_19, %c128], %9 {strides = array<i32>} : memref<8x16x256xbf16, #tpu.memory_space<vmem>>, vector<8x8x64xbf16>,
    %c0_20 = arith.constant 0 : index
    %c1_21 = arith.constant 1 : index
    %c1_22 = arith.constant 1 : index
    %c0_23 = arith.constant 0 : index
    %11 = vector.load %arg1[%c0_20, %c1_21, %c1_22, %c0_23] : memref<1x9x9x64xbf16, #tpu.memory_space<vmem>>, vector<1x8x8x64xbf16>
    %12 = vector.shape_cast %11 : vector<1x8x8x64xbf16> to vector<8x8x64xbf16>
    %c0_24 = arith.constant 0 : index
    %c0_25 = arith.constant 0 : index
    %c192 = arith.constant 192 : index
    %13 = vector.load %arg5[%c0_24, %c0_25, %c192] : memref<8x16x256xbf16, #tpu.memory_space<vmem>>, vector<8x8x64xbf16>
    tpu.vector_store %arg5[%c0_24, %c0_25, %c192], %12 {strides = array<i32>} : memref<8x16x256xbf16, #tpu.memory_space<vmem>>, vector<8x8x64xbf16>,
    %c0_26 = arith.constant 0 : index
    %c0_27 = arith.constant 0 : index
    %c0_28 = arith.constant 0 : index
    %14 = vector.load %arg5[%c0_26, %c0_27, %c0_28] : memref<8x16x256xbf16, #tpu.memory_space<vmem>>, vector<8x16x256xbf16>
    %15 = vector.shape_cast %14 : vector<8x16x256xbf16> to vector<128x256xbf16>
    %c0_29 = arith.constant 0 : index
    %c0_30 = arith.constant 0 : index
    %16 = vector.load %arg2[%c0_29, %c0_30] : memref<256x32xbf16, #tpu.memory_space<vmem>>, vector<256x32xbf16>
    %cst_31 = arith.constant dense<0.000000e+00> : vector<128x32xf32>
    %17 = tpu.matmul %15, %16, %cst_31 {dimension_numbers = #tpu.dot_dimension_numbers<[1], [0], [0], [1], [0, 0, 1, 1], [], []>} : vector<128x256xbf16>, vector<256x32xbf16>, vector<128x32xf32> -> vector<128x32xf32>
    %c0_32 = arith.constant 0 : index
    %c0_33 = arith.constant 0 : index
    %18 = vector.load %arg3[%c0_32, %c0_33] : memref<1x32xf32, #tpu.memory_space<vmem>>, vector<1x32xf32>
    %19 = vector.broadcast %18 : vector<1x32xf32> to vector<128x32xf32>
    %20 = arith.addf %17, %19 : vector<128x32xf32>
    %cst_34 = arith.constant 0.000000e+00 : f32
    %21 = vector.broadcast %cst_34 : f32 to vector<128x32xf32>
    %22 = arith.maximumf %20, %21 : vector<128x32xf32>
    %23 = vector.shape_cast %22 : vector<128x32xf32> to vector<8x16x32xf32>
    %24 = vector.extract_strided_slice %23 {offsets = [0, 0, 0], sizes = [8, 8, 32], strides = [1, 1, 1]} : vector<8x16x32xf32> to vector<8x8x32xf32>
    %25 = arith.truncf %24 : vector<8x8x32xf32> to vector<8x8x32xbf16>
    %c0_35 = arith.constant 0 : index
    %c0_36 = arith.constant 0 : index
    %c0_37 = arith.constant 0 : index
    %c0_38 = arith.constant 0 : index
    %26 = vector.load %arg4[%c0_35, %c0_36, %c0_37, %c0_38] : memref<1x8x8x32xbf16, #tpu.memory_space<vmem>>, vector<1x8x8x32xbf16>
    %27 = vector.shape_cast %26 : vector<1x8x8x32xbf16> to vector<8x8x32xbf16>
    %28 = vector.shape_cast %25 : vector<8x8x32xbf16> to vector<1x8x8x32xbf16>
    tpu.vector_store %arg4[%c0_35, %c0_36, %c0_37, %c0_38], %28 {strides = array<i32>} : memref<1x8x8x32xbf16, #tpu.memory_space<vmem>>, vector<1x8x8x32xbf16>,
    return
  }
  func.func @transform_0(%arg0: i32) -> (i32, i32, i32, i32) {
    %c0_i32 = arith.constant 0 : i32
    %c0_i32_0 = arith.constant 0 : i32
    %c0_i32_1 = arith.constant 0 : i32
    %c0_i32_2 = arith.constant 0 : i32
    return %arg0, %c0_i32, %c0_i32_0, %c0_i32_1 : i32, i32, i32, i32
  }
  func.func @transform_1(%arg0: i32) -> (i32, i32) {
    %c0_i32 = arith.constant 0 : i32
    %c0_i32_0 = arith.constant 0 : i32
    %c0_i32_1 = arith.constant 0 : i32
    return %c0_i32, %c0_i32_0 : i32, i32
  }
  func.func @transform_2(%arg0: i32) -> (i32, i32) {
    %c0_i32 = arith.constant 0 : i32
    %c0_i32_0 = arith.constant 0 : i32
    %c0_i32_1 = arith.constant 0 : i32
    return %c0_i32, %c0_i32_0 : i32, i32
  }
  func.func @transform_3(%arg0: i32) -> (i32, i32, i32, i32) {
    %c0_i32 = arith.constant 0 : i32
    %c0_i32_0 = arith.constant 0 : i32
    %c0_i32_1 = arith.constant 0 : i32
    %c0_i32_2 = arith.constant 0 : i32
    return %arg0, %c0_i32, %c0_i32_0, %c0_i32_1 : i32, i32, i32, i32
  }
}

module attributes {stable_mosaic.version = 11 : i64} {
  func.func @_conv23_kernel(%arg0: i32, %arg1: memref<1x4x4x128xbf16, #tpu.memory_space<vmem>>, %arg2: memref<512x64xbf16, #tpu.memory_space<vmem>>, %arg3: memref<1x64xf32, #tpu.memory_space<vmem>>, %arg4: memref<576x64xbf16, #tpu.memory_space<vmem>>, %arg5: memref<1x64xf32, #tpu.memory_space<vmem>>, %arg6: memref<1x1x1x64xbf16, #tpu.memory_space<vmem>>, %arg7: memref<3x16x512xbf16, #tpu.memory_space<vmem>>, %arg8: memref<3x3x64xbf16, #tpu.memory_space<vmem>>, %arg9: memref<1x16x576xbf16, #tpu.memory_space<vmem>>) attributes {dimension_semantics = [#tpu.dimension_semantics<parallel>], iteration_bounds = array<i64: 2>, scalar_prefetch = 0 : i64, scratch_operands = 3 : i64, tpu.core_type = #tpu.core_type<tc>, window_params = [{transform_indices = @transform_0, window_bounds = array<i64: 1, 4, 4, 128>}, {pipeline_mode = #tpu.pipeline_mode<synchronous>, transform_indices = @transform_1, window_bounds = array<i64: 512, 64>}, {pipeline_mode = #tpu.pipeline_mode<synchronous>, transform_indices = @transform_2, window_bounds = array<i64: 1, 64>}, {pipeline_mode = #tpu.pipeline_mode<synchronous>, transform_indices = @transform_3, window_bounds = array<i64: 576, 64>}, {pipeline_mode = #tpu.pipeline_mode<synchronous>, transform_indices = @transform_4, window_bounds = array<i64: 1, 64>}, {transform_indices = @transform_5, window_bounds = array<i64: 1, 1, 1, 64>}]} {
    %cst = arith.constant 0.000000e+00 : bf16
    %0 = vector.broadcast %cst : bf16 to vector<3x16x512xbf16>
    %c0 = arith.constant 0 : index
    %c0_0 = arith.constant 0 : index
    %c0_1 = arith.constant 0 : index
    %1 = vector.load %arg7[%c0, %c0_0, %c0_1] : memref<3x16x512xbf16, #tpu.memory_space<vmem>>, vector<3x16x512xbf16>
    tpu.vector_store %arg7[%c0, %c0_0, %c0_1], %0 {strides = array<i32>} : memref<3x16x512xbf16, #tpu.memory_space<vmem>>, vector<3x16x512xbf16>,
    %c0_2 = arith.constant 0 : index
    %c0_3 = arith.constant 0 : index
    %c0_4 = arith.constant 0 : index
    %c0_5 = arith.constant 0 : index
    %2 = vector.load %arg1[%c0_2, %c0_3, %c0_4, %c0_5] : memref<1x4x4x128xbf16, #tpu.memory_space<vmem>>, vector<1x3x3x128xbf16>
    %3 = vector.shape_cast %2 : vector<1x3x3x128xbf16> to vector<3x3x128xbf16>
    %c0_6 = arith.constant 0 : index
    %c0_7 = arith.constant 0 : index
    %c0_8 = arith.constant 0 : index
    %4 = vector.load %arg7[%c0_6, %c0_7, %c0_8] : memref<3x16x512xbf16, #tpu.memory_space<vmem>>, vector<3x3x128xbf16>
    tpu.vector_store %arg7[%c0_6, %c0_7, %c0_8], %3 {strides = array<i32>} : memref<3x16x512xbf16, #tpu.memory_space<vmem>>, vector<3x3x128xbf16>,
    %c0_9 = arith.constant 0 : index
    %c0_10 = arith.constant 0 : index
    %c1 = arith.constant 1 : index
    %c0_11 = arith.constant 0 : index
    %5 = vector.load %arg1[%c0_9, %c0_10, %c1, %c0_11] : memref<1x4x4x128xbf16, #tpu.memory_space<vmem>>, vector<1x3x3x128xbf16>
    %6 = vector.shape_cast %5 : vector<1x3x3x128xbf16> to vector<3x3x128xbf16>
    %c0_12 = arith.constant 0 : index
    %c0_13 = arith.constant 0 : index
    %c128 = arith.constant 128 : index
    %7 = vector.load %arg7[%c0_12, %c0_13, %c128] : memref<3x16x512xbf16, #tpu.memory_space<vmem>>, vector<3x3x128xbf16>
    tpu.vector_store %arg7[%c0_12, %c0_13, %c128], %6 {strides = array<i32>} : memref<3x16x512xbf16, #tpu.memory_space<vmem>>, vector<3x3x128xbf16>,
    %c0_14 = arith.constant 0 : index
    %c1_15 = arith.constant 1 : index
    %c0_16 = arith.constant 0 : index
    %c0_17 = arith.constant 0 : index
    %8 = vector.load %arg1[%c0_14, %c1_15, %c0_16, %c0_17] : memref<1x4x4x128xbf16, #tpu.memory_space<vmem>>, vector<1x3x3x128xbf16>
    %9 = vector.shape_cast %8 : vector<1x3x3x128xbf16> to vector<3x3x128xbf16>
    %c0_18 = arith.constant 0 : index
    %c0_19 = arith.constant 0 : index
    %c256 = arith.constant 256 : index
    %10 = vector.load %arg7[%c0_18, %c0_19, %c256] : memref<3x16x512xbf16, #tpu.memory_space<vmem>>, vector<3x3x128xbf16>
    tpu.vector_store %arg7[%c0_18, %c0_19, %c256], %9 {strides = array<i32>} : memref<3x16x512xbf16, #tpu.memory_space<vmem>>, vector<3x3x128xbf16>,
    %c0_20 = arith.constant 0 : index
    %c1_21 = arith.constant 1 : index
    %c1_22 = arith.constant 1 : index
    %c0_23 = arith.constant 0 : index
    %11 = vector.load %arg1[%c0_20, %c1_21, %c1_22, %c0_23] : memref<1x4x4x128xbf16, #tpu.memory_space<vmem>>, vector<1x3x3x128xbf16>
    %12 = vector.shape_cast %11 : vector<1x3x3x128xbf16> to vector<3x3x128xbf16>
    %c0_24 = arith.constant 0 : index
    %c0_25 = arith.constant 0 : index
    %c384 = arith.constant 384 : index
    %13 = vector.load %arg7[%c0_24, %c0_25, %c384] : memref<3x16x512xbf16, #tpu.memory_space<vmem>>, vector<3x3x128xbf16>
    tpu.vector_store %arg7[%c0_24, %c0_25, %c384], %12 {strides = array<i32>} : memref<3x16x512xbf16, #tpu.memory_space<vmem>>, vector<3x3x128xbf16>,
    %c0_26 = arith.constant 0 : index
    %c0_27 = arith.constant 0 : index
    %c0_28 = arith.constant 0 : index
    %14 = vector.load %arg7[%c0_26, %c0_27, %c0_28] : memref<3x16x512xbf16, #tpu.memory_space<vmem>>, vector<3x16x512xbf16>
    %15 = vector.shape_cast %14 : vector<3x16x512xbf16> to vector<48x512xbf16>
    %c0_29 = arith.constant 0 : index
    %c0_30 = arith.constant 0 : index
    %16 = vector.load %arg2[%c0_29, %c0_30] : memref<512x64xbf16, #tpu.memory_space<vmem>>, vector<512x64xbf16>
    %cst_31 = arith.constant dense<0.000000e+00> : vector<48x64xf32>
    %17 = tpu.matmul %15, %16, %cst_31 {dimension_numbers = #tpu.dot_dimension_numbers<[1], [0], [0], [1], [0, 0, 1, 1], [], []>} : vector<48x512xbf16>, vector<512x64xbf16>, vector<48x64xf32> -> vector<48x64xf32>
    %c0_32 = arith.constant 0 : index
    %c0_33 = arith.constant 0 : index
    %18 = vector.load %arg3[%c0_32, %c0_33] : memref<1x64xf32, #tpu.memory_space<vmem>>, vector<1x64xf32>
    %19 = vector.broadcast %18 : vector<1x64xf32> to vector<48x64xf32>
    %20 = arith.addf %17, %19 : vector<48x64xf32>
    %cst_34 = arith.constant 0.000000e+00 : f32
    %21 = vector.broadcast %cst_34 : f32 to vector<48x64xf32>
    %22 = arith.maximumf %20, %21 : vector<48x64xf32>
    %23 = vector.shape_cast %22 : vector<48x64xf32> to vector<3x16x64xf32>
    %24 = vector.extract_strided_slice %23 {offsets = [0, 0, 0], sizes = [3, 3, 64], strides = [1, 1, 1]} : vector<3x16x64xf32> to vector<3x3x64xf32>
    %25 = arith.truncf %24 : vector<3x3x64xf32> to vector<3x3x64xbf16>
    %c0_35 = arith.constant 0 : index
    %c0_36 = arith.constant 0 : index
    %c0_37 = arith.constant 0 : index
    %26 = vector.load %arg8[%c0_35, %c0_36, %c0_37] : memref<3x3x64xbf16, #tpu.memory_space<vmem>>, vector<3x3x64xbf16>
    tpu.vector_store %arg8[%c0_35, %c0_36, %c0_37], %25 {strides = array<i32>} : memref<3x3x64xbf16, #tpu.memory_space<vmem>>, vector<3x3x64xbf16>,
    %cst_38 = arith.constant 0.000000e+00 : bf16
    %27 = vector.broadcast %cst_38 : bf16 to vector<1x16x576xbf16>
    %c0_39 = arith.constant 0 : index
    %c0_40 = arith.constant 0 : index
    %c0_41 = arith.constant 0 : index
    %28 = vector.load %arg9[%c0_39, %c0_40, %c0_41] : memref<1x16x576xbf16, #tpu.memory_space<vmem>>, vector<1x16x576xbf16>
    tpu.vector_store %arg9[%c0_39, %c0_40, %c0_41], %27 {strides = array<i32>} : memref<1x16x576xbf16, #tpu.memory_space<vmem>>, vector<1x16x576xbf16>,
    %c0_42 = arith.constant 0 : index
    %c0_43 = arith.constant 0 : index
    %c0_44 = arith.constant 0 : index
    %29 = vector.load %arg8[%c0_42, %c0_43, %c0_44] : memref<3x3x64xbf16, #tpu.memory_space<vmem>>, vector<1x1x64xbf16>
    %c0_45 = arith.constant 0 : index
    %c0_46 = arith.constant 0 : index
    %c0_47 = arith.constant 0 : index
    %30 = vector.load %arg9[%c0_45, %c0_46, %c0_47] : memref<1x16x576xbf16, #tpu.memory_space<vmem>>, vector<1x1x64xbf16>
    tpu.vector_store %arg9[%c0_45, %c0_46, %c0_47], %29 {strides = array<i32>} : memref<1x16x576xbf16, #tpu.memory_space<vmem>>, vector<1x1x64xbf16>,
    %c0_48 = arith.constant 0 : index
    %c1_49 = arith.constant 1 : index
    %c0_50 = arith.constant 0 : index
    %31 = vector.load %arg8[%c0_48, %c1_49, %c0_50] : memref<3x3x64xbf16, #tpu.memory_space<vmem>>, vector<1x1x64xbf16>
    %c0_51 = arith.constant 0 : index
    %c0_52 = arith.constant 0 : index
    %c64 = arith.constant 64 : index
    %32 = vector.load %arg9[%c0_51, %c0_52, %c64] : memref<1x16x576xbf16, #tpu.memory_space<vmem>>, vector<1x1x64xbf16>
    tpu.vector_store %arg9[%c0_51, %c0_52, %c64], %31 {strides = array<i32>} : memref<1x16x576xbf16, #tpu.memory_space<vmem>>, vector<1x1x64xbf16>,
    %c0_53 = arith.constant 0 : index
    %c2 = arith.constant 2 : index
    %c0_54 = arith.constant 0 : index
    %33 = vector.load %arg8[%c0_53, %c2, %c0_54] : memref<3x3x64xbf16, #tpu.memory_space<vmem>>, vector<1x1x64xbf16>
    %c0_55 = arith.constant 0 : index
    %c0_56 = arith.constant 0 : index
    %c128_57 = arith.constant 128 : index
    %34 = vector.load %arg9[%c0_55, %c0_56, %c128_57] : memref<1x16x576xbf16, #tpu.memory_space<vmem>>, vector<1x1x64xbf16>
    tpu.vector_store %arg9[%c0_55, %c0_56, %c128_57], %33 {strides = array<i32>} : memref<1x16x576xbf16, #tpu.memory_space<vmem>>, vector<1x1x64xbf16>,
    %c1_58 = arith.constant 1 : index
    %c0_59 = arith.constant 0 : index
    %c0_60 = arith.constant 0 : index
    %35 = vector.load %arg8[%c1_58, %c0_59, %c0_60] : memref<3x3x64xbf16, #tpu.memory_space<vmem>>, vector<1x1x64xbf16>
    %c0_61 = arith.constant 0 : index
    %c0_62 = arith.constant 0 : index
    %c192 = arith.constant 192 : index
    %36 = vector.load %arg9[%c0_61, %c0_62, %c192] : memref<1x16x576xbf16, #tpu.memory_space<vmem>>, vector<1x1x64xbf16>
    tpu.vector_store %arg9[%c0_61, %c0_62, %c192], %35 {strides = array<i32>} : memref<1x16x576xbf16, #tpu.memory_space<vmem>>, vector<1x1x64xbf16>,
    %c1_63 = arith.constant 1 : index
    %c1_64 = arith.constant 1 : index
    %c0_65 = arith.constant 0 : index
    %37 = vector.load %arg8[%c1_63, %c1_64, %c0_65] : memref<3x3x64xbf16, #tpu.memory_space<vmem>>, vector<1x1x64xbf16>
    %c0_66 = arith.constant 0 : index
    %c0_67 = arith.constant 0 : index
    %c256_68 = arith.constant 256 : index
    %38 = vector.load %arg9[%c0_66, %c0_67, %c256_68] : memref<1x16x576xbf16, #tpu.memory_space<vmem>>, vector<1x1x64xbf16>
    tpu.vector_store %arg9[%c0_66, %c0_67, %c256_68], %37 {strides = array<i32>} : memref<1x16x576xbf16, #tpu.memory_space<vmem>>, vector<1x1x64xbf16>,
    %c1_69 = arith.constant 1 : index
    %c2_70 = arith.constant 2 : index
    %c0_71 = arith.constant 0 : index
    %39 = vector.load %arg8[%c1_69, %c2_70, %c0_71] : memref<3x3x64xbf16, #tpu.memory_space<vmem>>, vector<1x1x64xbf16>
    %c0_72 = arith.constant 0 : index
    %c0_73 = arith.constant 0 : index
    %c320 = arith.constant 320 : index
    %40 = vector.load %arg9[%c0_72, %c0_73, %c320] : memref<1x16x576xbf16, #tpu.memory_space<vmem>>, vector<1x1x64xbf16>
    tpu.vector_store %arg9[%c0_72, %c0_73, %c320], %39 {strides = array<i32>} : memref<1x16x576xbf16, #tpu.memory_space<vmem>>, vector<1x1x64xbf16>,
    %c2_74 = arith.constant 2 : index
    %c0_75 = arith.constant 0 : index
    %c0_76 = arith.constant 0 : index
    %41 = vector.load %arg8[%c2_74, %c0_75, %c0_76] : memref<3x3x64xbf16, #tpu.memory_space<vmem>>, vector<1x1x64xbf16>
    %c0_77 = arith.constant 0 : index
    %c0_78 = arith.constant 0 : index
    %c384_79 = arith.constant 384 : index
    %42 = vector.load %arg9[%c0_77, %c0_78, %c384_79] : memref<1x16x576xbf16, #tpu.memory_space<vmem>>, vector<1x1x64xbf16>
    tpu.vector_store %arg9[%c0_77, %c0_78, %c384_79], %41 {strides = array<i32>} : memref<1x16x576xbf16, #tpu.memory_space<vmem>>, vector<1x1x64xbf16>,
    %c2_80 = arith.constant 2 : index
    %c1_81 = arith.constant 1 : index
    %c0_82 = arith.constant 0 : index
    %43 = vector.load %arg8[%c2_80, %c1_81, %c0_82] : memref<3x3x64xbf16, #tpu.memory_space<vmem>>, vector<1x1x64xbf16>
    %c0_83 = arith.constant 0 : index
    %c0_84 = arith.constant 0 : index
    %c448 = arith.constant 448 : index
    %44 = vector.load %arg9[%c0_83, %c0_84, %c448] : memref<1x16x576xbf16, #tpu.memory_space<vmem>>, vector<1x1x64xbf16>
    tpu.vector_store %arg9[%c0_83, %c0_84, %c448], %43 {strides = array<i32>} : memref<1x16x576xbf16, #tpu.memory_space<vmem>>, vector<1x1x64xbf16>,
    %c2_85 = arith.constant 2 : index
    %c2_86 = arith.constant 2 : index
    %c0_87 = arith.constant 0 : index
    %45 = vector.load %arg8[%c2_85, %c2_86, %c0_87] : memref<3x3x64xbf16, #tpu.memory_space<vmem>>, vector<1x1x64xbf16>
    %c0_88 = arith.constant 0 : index
    %c0_89 = arith.constant 0 : index
    %c512 = arith.constant 512 : index
    %46 = vector.load %arg9[%c0_88, %c0_89, %c512] : memref<1x16x576xbf16, #tpu.memory_space<vmem>>, vector<1x1x64xbf16>
    tpu.vector_store %arg9[%c0_88, %c0_89, %c512], %45 {strides = array<i32>} : memref<1x16x576xbf16, #tpu.memory_space<vmem>>, vector<1x1x64xbf16>,
    %c0_90 = arith.constant 0 : index
    %c0_91 = arith.constant 0 : index
    %c0_92 = arith.constant 0 : index
    %47 = vector.load %arg9[%c0_90, %c0_91, %c0_92] : memref<1x16x576xbf16, #tpu.memory_space<vmem>>, vector<1x16x576xbf16>
    %48 = vector.shape_cast %47 : vector<1x16x576xbf16> to vector<16x576xbf16>
    %c0_93 = arith.constant 0 : index
    %c0_94 = arith.constant 0 : index
    %49 = vector.load %arg4[%c0_93, %c0_94] : memref<576x64xbf16, #tpu.memory_space<vmem>>, vector<576x64xbf16>
    %cst_95 = arith.constant dense<0.000000e+00> : vector<16x64xf32>
    %50 = tpu.matmul %48, %49, %cst_95 {dimension_numbers = #tpu.dot_dimension_numbers<[1], [0], [0], [1], [0, 0, 1, 1], [], []>} : vector<16x576xbf16>, vector<576x64xbf16>, vector<16x64xf32> -> vector<16x64xf32>
    %c0_96 = arith.constant 0 : index
    %c0_97 = arith.constant 0 : index
    %51 = vector.load %arg5[%c0_96, %c0_97] : memref<1x64xf32, #tpu.memory_space<vmem>>, vector<1x64xf32>
    %52 = vector.broadcast %51 : vector<1x64xf32> to vector<16x64xf32>
    %53 = arith.addf %50, %52 : vector<16x64xf32>
    %cst_98 = arith.constant 0.000000e+00 : f32
    %54 = vector.broadcast %cst_98 : f32 to vector<16x64xf32>
    %55 = arith.maximumf %53, %54 : vector<16x64xf32>
    %56 = vector.shape_cast %55 : vector<16x64xf32> to vector<1x16x64xf32>
    %57 = vector.extract_strided_slice %56 {offsets = [0, 0, 0], sizes = [1, 1, 64], strides = [1, 1, 1]} : vector<1x16x64xf32> to vector<1x1x64xf32>
    %58 = arith.truncf %57 : vector<1x1x64xf32> to vector<1x1x64xbf16>
    %c0_99 = arith.constant 0 : index
    %c0_100 = arith.constant 0 : index
    %c0_101 = arith.constant 0 : index
    %c0_102 = arith.constant 0 : index
    %59 = vector.load %arg6[%c0_99, %c0_100, %c0_101, %c0_102] : memref<1x1x1x64xbf16, #tpu.memory_space<vmem>>, vector<1x1x1x64xbf16>
    %60 = vector.shape_cast %59 : vector<1x1x1x64xbf16> to vector<1x1x64xbf16>
    %61 = vector.shape_cast %58 : vector<1x1x64xbf16> to vector<1x1x1x64xbf16>
    tpu.vector_store %arg6[%c0_99, %c0_100, %c0_101, %c0_102], %61 {strides = array<i32>} : memref<1x1x1x64xbf16, #tpu.memory_space<vmem>>, vector<1x1x1x64xbf16>,
    return
  }
  func.func @transform_0(%arg0: i32) -> (i32, i32, i32, i32) {
    %c0_i32 = arith.constant 0 : i32
    %c0_i32_0 = arith.constant 0 : i32
    %c0_i32_1 = arith.constant 0 : i32
    %c0_i32_2 = arith.constant 0 : i32
    return %arg0, %c0_i32, %c0_i32_0, %c0_i32_1 : i32, i32, i32, i32
  }
  func.func @transform_1(%arg0: i32) -> (i32, i32) {
    %c0_i32 = arith.constant 0 : i32
    %c0_i32_0 = arith.constant 0 : i32
    %c0_i32_1 = arith.constant 0 : i32
    return %c0_i32, %c0_i32_0 : i32, i32
  }
  func.func @transform_2(%arg0: i32) -> (i32, i32) {
    %c0_i32 = arith.constant 0 : i32
    %c0_i32_0 = arith.constant 0 : i32
    %c0_i32_1 = arith.constant 0 : i32
    return %c0_i32, %c0_i32_0 : i32, i32
  }
  func.func @transform_3(%arg0: i32) -> (i32, i32) {
    %c0_i32 = arith.constant 0 : i32
    %c0_i32_0 = arith.constant 0 : i32
    %c0_i32_1 = arith.constant 0 : i32
    return %c0_i32, %c0_i32_0 : i32, i32
  }
  func.func @transform_4(%arg0: i32) -> (i32, i32) {
    %c0_i32 = arith.constant 0 : i32
    %c0_i32_0 = arith.constant 0 : i32
    %c0_i32_1 = arith.constant 0 : i32
    return %c0_i32, %c0_i32_0 : i32, i32
  }
  func.func @transform_5(%arg0: i32) -> (i32, i32, i32, i32) {
    %c0_i32 = arith.constant 0 : i32
    %c0_i32_0 = arith.constant 0 : i32
    %c0_i32_1 = arith.constant 0 : i32
    %c0_i32_2 = arith.constant 0 : i32
    return %arg0, %c0_i32, %c0_i32_0, %c0_i32_1 : i32, i32, i32, i32
  }
}

module attributes {stable_mosaic.version = 11 : i64} {
  func.func @_fc_head_kernel(%arg0: i32, %arg1: memref<16x64xbf16, #tpu.memory_space<vmem>>, %arg2: memref<64x512xbf16, #tpu.memory_space<vmem>>, %arg3: memref<1x512xf32, #tpu.memory_space<vmem>>, %arg4: memref<512x128xbf16, #tpu.memory_space<vmem>>, %arg5: memref<1x128xf32, #tpu.memory_space<vmem>>, %arg6: memref<16x128xf32, #tpu.memory_space<vmem>>) attributes {dimension_semantics = [#tpu.dimension_semantics<parallel>], iteration_bounds = array<i64: 1>, scalar_prefetch = 0 : i64, scratch_operands = 0 : i64, tpu.core_type = #tpu.core_type<tc>, window_params = [{transform_indices = @transform_0, window_bounds = array<i64: 16, 64>}, {pipeline_mode = #tpu.pipeline_mode<synchronous>, transform_indices = @transform_1, window_bounds = array<i64: 64, 512>}, {pipeline_mode = #tpu.pipeline_mode<synchronous>, transform_indices = @transform_2, window_bounds = array<i64: 1, 512>}, {pipeline_mode = #tpu.pipeline_mode<synchronous>, transform_indices = @transform_3, window_bounds = array<i64: 512, 128>}, {pipeline_mode = #tpu.pipeline_mode<synchronous>, transform_indices = @transform_4, window_bounds = array<i64: 1, 128>}, {transform_indices = @transform_5, window_bounds = array<i64: 16, 128>}]} {
    %c0 = arith.constant 0 : index
    %c0_0 = arith.constant 0 : index
    %0 = vector.load %arg1[%c0, %c0_0] : memref<16x64xbf16, #tpu.memory_space<vmem>>, vector<16x64xbf16>
    %c0_1 = arith.constant 0 : index
    %c0_2 = arith.constant 0 : index
    %1 = vector.load %arg2[%c0_1, %c0_2] : memref<64x512xbf16, #tpu.memory_space<vmem>>, vector<64x512xbf16>
    %cst = arith.constant dense<0.000000e+00> : vector<16x512xf32>
    %2 = tpu.matmul %0, %1, %cst {dimension_numbers = #tpu.dot_dimension_numbers<[1], [0], [0], [1], [0, 0, 1, 1], [], []>} : vector<16x64xbf16>, vector<64x512xbf16>, vector<16x512xf32> -> vector<16x512xf32>
    %c0_3 = arith.constant 0 : index
    %c0_4 = arith.constant 0 : index
    %3 = vector.load %arg3[%c0_3, %c0_4] : memref<1x512xf32, #tpu.memory_space<vmem>>, vector<1x512xf32>
    %4 = vector.broadcast %3 : vector<1x512xf32> to vector<16x512xf32>
    %5 = arith.addf %2, %4 : vector<16x512xf32>
    %cst_5 = arith.constant 0.000000e+00 : f32
    %6 = vector.broadcast %cst_5 : f32 to vector<16x512xf32>
    %7 = arith.maximumf %5, %6 : vector<16x512xf32>
    %8 = arith.truncf %7 : vector<16x512xf32> to vector<16x512xbf16>
    %c0_6 = arith.constant 0 : index
    %c0_7 = arith.constant 0 : index
    %9 = vector.load %arg4[%c0_6, %c0_7] : memref<512x128xbf16, #tpu.memory_space<vmem>>, vector<512x128xbf16>
    %cst_8 = arith.constant dense<0.000000e+00> : vector<16x128xf32>
    %10 = tpu.matmul %8, %9, %cst_8 {dimension_numbers = #tpu.dot_dimension_numbers<[1], [0], [0], [1], [0, 0, 1, 1], [], []>} : vector<16x512xbf16>, vector<512x128xbf16>, vector<16x128xf32> -> vector<16x128xf32>
    %c0_9 = arith.constant 0 : index
    %c0_10 = arith.constant 0 : index
    %11 = vector.load %arg5[%c0_9, %c0_10] : memref<1x128xf32, #tpu.memory_space<vmem>>, vector<1x128xf32>
    %12 = vector.broadcast %11 : vector<1x128xf32> to vector<16x128xf32>
    %13 = arith.addf %10, %12 : vector<16x128xf32>
    %c0_11 = arith.constant 0 : index
    %c0_12 = arith.constant 0 : index
    %14 = vector.load %arg6[%c0_11, %c0_12] : memref<16x128xf32, #tpu.memory_space<vmem>>, vector<16x128xf32>
    tpu.vector_store %arg6[%c0_11, %c0_12], %13 {strides = array<i32>} : memref<16x128xf32, #tpu.memory_space<vmem>>, vector<16x128xf32>,
    return
  }
  func.func @transform_0(%arg0: i32) -> (i32, i32) {
    %c0_i32 = arith.constant 0 : i32
    %c0_i32_0 = arith.constant 0 : i32
    return %arg0, %c0_i32 : i32, i32
  }
  func.func @transform_1(%arg0: i32) -> (i32, i32) {
    %c0_i32 = arith.constant 0 : i32
    %c0_i32_0 = arith.constant 0 : i32
    %c0_i32_1 = arith.constant 0 : i32
    return %c0_i32, %c0_i32_0 : i32, i32
  }
  func.func @transform_2(%arg0: i32) -> (i32, i32) {
    %c0_i32 = arith.constant 0 : i32
    %c0_i32_0 = arith.constant 0 : i32
    %c0_i32_1 = arith.constant 0 : i32
    return %c0_i32, %c0_i32_0 : i32, i32
  }
  func.func @transform_3(%arg0: i32) -> (i32, i32) {
    %c0_i32 = arith.constant 0 : i32
    %c0_i32_0 = arith.constant 0 : i32
    %c0_i32_1 = arith.constant 0 : i32
    return %c0_i32, %c0_i32_0 : i32, i32
  }
  func.func @transform_4(%arg0: i32) -> (i32, i32) {
    %c0_i32 = arith.constant 0 : i32
    %c0_i32_0 = arith.constant 0 : i32
    %c0_i32_1 = arith.constant 0 : i32
    return %c0_i32, %c0_i32_0 : i32, i32
  }
  func.func @transform_5(%arg0: i32) -> (i32, i32) {
    %c0_i32 = arith.constant 0 : i32
    %c0_i32_0 = arith.constant 0 : i32
    return %arg0, %c0_i32 : i32, i32
  }
}

</mosaic_0001>

<bundles_post_ra>
// kernel: cnn_dqn_forward.3
= control target key start
LH: loop header
LB: loop body
LE: loop exit
PB: predicated region body
PF: predicated region fallthrough
CT: control target
= control target key end

     0   :  { %s1052_s12 = smov 0   ;;  %s1234_s0 = inlined_call_operand.vmem [shape: bf16[2,9,9,64], index: 0, kind: input, shape index: {}]   ;;  %s1235_s1 = inlined_call_operand.vmem [shape: bf16[256,32], index: 1, kind: input, shape index: {}]   ;;  %s1236_s2 = inlined_call_operand.vmem [shape: f32[1,32], index: 2, kind: input, shape index: {}]   ;;  %s1237_s3 = inlined_call_operand.vmem [shape: bf16[2,8,8,32], index: 3, kind: output, shape index: {}]  }
   0x1 LB: > { %s831_s13 = sadd.s32 4294967295, %s1028_s12   ;;  %p835_p0 = scmp.ge.s32.totalorder %s1028_s12, 1  ;;  %s1028_s12 = sphi %s1052_s12, %s13_s12  }
   0x2   : > { %p137_p1 = scmp.lt.s32.totalorder %s1028_s12, 3 }
   0x4   : > { %p138_p2 = pnand %p835_p0, %p137_p1 }
   0x5   : > { %p161_p3 = scmp.lt.s32.totalorder (!%p138_p2), %s831_s13, 1  ;;  %v1006_v0 = vld [vmem:[%s1235_s1 + $0x40] sm:$0xff] (!%p138_p2)   ;;  %v1030_v2 = vmov (!%p138_p2), 0   ;;  %v1008_v3 = vld [vmem:[%s1235_s1 + $0x48] sm:$0xff] (!%p138_p2)   ;;  %v1010_v5 = vld [vmem:[%s1235_s1 + $0x50] sm:$0xff] (!%p138_p2)   ;;  %s1031_s9 = smov (!%p138_p2), 64  }
   0x6   : > { %141 = sbr.rel (%p138_p2) target bundleno = 398 (0x18e), region = 32  ;;  %v1007_v1 = vld [vmem:[%s1235_s1] sm:$0xff] (!%p138_p2)   ;;  %173 = vst [vmem:[#allocation2 + $0x8] sm:$0xff] (!%p138_p2), %v1030_v2  ;;  %172 = vst [vmem:[#allocation2] sm:$0xff] (!%p138_p2), %v1030_v2  ;;  %899 = vmatprep.subr.bf16.mxu0 (!%p138_p2), %v1006_v0  ;;  %963 = vmatprep.subr.bf16.mxu1 (!%p138_p2), %v1006_v0  ;;  %v1009_v4 = vld [vmem:[%s1235_s1 + $0x8] sm:$0xff] (!%p138_p2)   ;;  %vm196_vm0 = vcmask (!%p138_p2), 519168  }
   0x7   : > { %174 = vst [vmem:[#allocation2 + $0x10] sm:$0xff] (!%p138_p2), %v1030_v2  ;;  %175 = vst [vmem:[#allocation2 + $0x18] sm:$0xff] (!%p138_p2), %v1030_v2  ;;  %900 = vmatpush3.bf16.msra.mxu0 (!%p138_p2), %v1007_v1  ;;  %971 = vmatpush3.bf16.msra.mxu1 (!%p138_p2), %v1007_v1  ;;  %v1011_v6 = vld [vmem:[%s1235_s1 + $0x10] sm:$0xff] (!%p138_p2)   ;;  %v1012_v16 = vld [vmem:[%s1235_s1 + $0x58] sm:$0xff] (!%p138_p2)   ;;  %vm341_vm1 = vcmask (!%p138_p2), 1043968   ;;  %vm767_vm2 = vcmask (!%p138_p2), 257024  }
   0x8   : > { %176 = vst [vmem:[#allocation2 + $0x20] sm:$0xff] (!%p138_p2), %v1030_v2  ;;  %177 = vst [vmem:[#allocation2 + $0x28] sm:$0xff] (!%p138_p2), %v1030_v2  ;;  %901 = vmatprep.subr.bf16.mxu0 (!%p138_p2), %v1008_v3  ;;  %964 = vmatprep.subr.bf16.mxu1 (!%p138_p2), %v1008_v3  ;;  %v1013_v20 = vld [vmem:[%s1235_s1 + $0x18] sm:$0xff] (!%p138_p2)   ;;  %v1014_v27 = vld [vmem:[%s1235_s1 + $0x60] sm:$0xff] (!%p138_p2)  }
   0x9   : > { %178 = vst [vmem:[#allocation2 + $0x30] sm:$0xff] (!%p138_p2), %v1030_v2  ;;  %179 = vst [vmem:[#allocation2 + $0x38] sm:$0xff] (!%p138_p2), %v1030_v2  ;;  %v1015_v32 = vld [vmem:[%s1235_s1 + $0x20] sm:$0xff] (!%p138_p2)   ;;  %v1016_v39 = vld [vmem:[%s1235_s1 + $0x68] sm:$0xff] (!%p138_p2)  }
   0xa   : > { %180 = vst [vmem:[#allocation2 + $0x40] sm:$0xff] (!%p138_p2), %v1030_v2  ;;  %181 = vst [vmem:[#allocation2 + $0x48] sm:$0xff] (!%p138_p2), %v1030_v2  ;;  %v1017_v45 = vld [vmem:[%s1235_s1 + $0x28] sm:$0xff] (!%p138_p2)   ;;  %v1018_v50 = vld [vmem:[%s1235_s1 + $0x70] sm:$0xff] (!%p138_p2)  }
   0xb   : > { %182 = vst [vmem:[#allocation2 + $0x50] sm:$0xff] (!%p138_p2), %v1030_v2  ;;  %183 = vst [vmem:[#allocation2 + $0x58] sm:$0xff] (!%p138_p2), %v1030_v2  ;;  %902 = vmatpush3.bf16.msra.mxu0 (!%p138_p2), %v1009_v4  ;;  %972 = vmatpush3.bf16.msra.mxu1 (!%p138_p2), %v1009_v4  ;;  %v1019_v59 = vld [vmem:[%s1235_s1 + $0x30] sm:$0xff] (!%p138_p2)  }
   0xc   : > { %184 = vst [vmem:[#allocation2 + $0x60] sm:$0xff] (!%p138_p2), %v1030_v2  ;;  %185 = vst [vmem:[#allocation2 + $0x68] sm:$0xff] (!%p138_p2), %v1030_v2  ;;  %903 = vmatprep.subr.bf16.mxu0 (!%p138_p2), %v1010_v5  ;;  %965 = vmatprep.subr.bf16.mxu1 (!%p138_p2), %v1010_v5 }
   0xd   : > { %s1239_s13 = smov (!%p161_p3, %s831_s13), 1  ;;  %186 = vst [vmem:[#allocation2 + $0x70] sm:$0xff] %v1030_v2  ;;  %187 = vst [vmem:[#allocation2 + $0x78] sm:$0xff] %v1030_v2  ;;  %v1020_v2 = vld [vmem:[%s1235_s1 + $0x78] sm:$0xff]  }
   0xe   : > { %s979_s20 = smul.u32 72, %s1239_s13  ;;  %s898_s28 = sshll.u32 %s1239_s13, 5 }
   0xf   : > { %904 = vmatpush3.bf16.msra.mxu0 %v1011_v6  ;;  %973 = vmatpush3.bf16.msra.mxu1 %v1011_v6  ;;  %s1206_s4 = scalar_lea.vmem %s1237_s3, %s898_s28 }
  0x10   : > { %s1081_s27 = scalar_lea.vmem %s1234_s0, %s979_s20  ;;  %905 = vmatprep.subr.bf16.mxu0 %v1012_v16  ;;  %966 = vmatprep.subr.bf16.mxu1 %v1012_v16 }
  0x11   : > { %v990_v7 = vld [vmem:[%s1081_s27 + $0x8] sm:$0x1f]   ;;  %v991_v8 = vld [vmem:[%s1081_s27] sm:$0x1f]   ;;  %v994_v24 = vld [vmem:[%s1081_s27 + $0x10] sm:$0x1f]  }
  0x12   : > { %v424_v9 = vshrl.u32 %v990_v7, 16  ;;  %v426_v10 = vshll.u32 %v990_v7, 16  ;;  %v262_v11 = vshrl.u32 %v991_v8, 16  ;;  %v264_v12 = vshll.u32 %v991_v8, 16  ;;  %v992_v13 = vld [vmem:[%s1081_s27 + $0x28] sm:$0x1f]  }
  0x13   : > { %v993_v15 = vld [vmem:[%s1081_s27 + $0x20] sm:$0x1f]   ;;  %v452_v18 = vshrl.u32 %v992_v13, 16  ;;  %v454_v19 = vshll.u32 %v992_v13, 16  ;;  %v431_v29 = vshrl.u32 %v994_v24, 16  ;;  %v433_v30 = vshll.u32 %v994_v24, 16  ;;  %906 = vmatpush3.bf16.msra.mxu0 %v1013_v20  ;;  %974 = vmatpush3.bf16.msra.mxu1 %v1013_v20 }
  0x14   : > { %v428_v14 = vrot.slane %v426_v10, 1  ;;  %v266_v17 = vrot.slane %v264_v12, 1  ;;  %v290_v22 = vshrl.u32 %v993_v15, 16  ;;  %v292_v23 = vshll.u32 %v993_v15, 16  ;;  %v995_v31 = vld [vmem:[%s1081_s27 + $0x30] sm:$0x1f]   ;;  %907 = vmatprep.subr.bf16.mxu0 %v1014_v27  ;;  %967 = vmatprep.subr.bf16.mxu1 %v1014_v27 }
  0x15   : > { %v456_v26 = vrot.slane %v454_v19, 1  ;;  %v996_v34 = vld [vmem:[%s1081_s27 + $0x8] sm:$0x1f]   ;;  %v435_v36 = vrot.slane %v433_v30, 1  ;;  %v459_v37 = vshrl.u32 %v995_v31, 16  ;;  %v461_v38 = vshll.u32 %v995_v31, 16 }
  0x16   : > { %v429_v21 = vor.u32 %v428_v14, %v424_v9  ;;  %v267_v25 = vor.u32 %v266_v17, %v262_v11  ;;  %v294_v28 = vrot.slane %v292_v23, 1  ;;  %v269_v40 = vshrl.u32 %v996_v34, 16  ;;  %v997_v42 = vld [vmem:[%s1081_s27 + $0x28] sm:$0x1f]   ;;  %v998_v49 = vld [vmem:[%s1081_s27 + $0x18] sm:$0x1f]  }
  0x17   : > { %v457_v33 = vor.u32 %v456_v26, %v452_v18  ;;  %v271_v41 = vshll.u32 %v996_v34, 16  ;;  %v436_v43 = vor.u32 %v435_v36, %v431_v29  ;;  %v463_v44 = vrot.slane %v461_v38, 1  ;;  %908 = vmatpush3.bf16.msra.mxu0 %v1015_v32  ;;  %v999_v52 = vld [vmem:[%s1081_s27 + $0x38] sm:$0x1f]   ;;  %975 = vmatpush3.bf16.msra.mxu1 %v1015_v32  ;;  %v1000_v58 = vld [vmem:[%s1081_s27 + $0x10] sm:$0x1f]  }
  0x18   : > { %479 = vrot.lane.b32.xlu0 %v429_v21, %s1031_s9  ;;  %317 = vrot.lane.b32.xlu1 %v267_v25, %s1031_s9  ;;  %v295_v35 = vor.u32 %v294_v28, %v290_v22  ;;  %v297_v47 = vshrl.u32 %v997_v42, 16  ;;  %v299_v48 = vshll.u32 %v997_v42, 16  ;;  %v438_v54 = vshrl.u32 %v998_v49, 16  ;;  %v1001_v1 = vld [vmem:[%s1081_s27 + $0x30] sm:$0x1f]   ;;  %v1021_v8 = vld [vmem:[%s1235_s1 + $0x38] sm:$0xff]  }
  0x19   : > { %v273_v46 = vrot.slane %v271_v41, 1  ;;  %v464_v51 = vor.u32 %v463_v44, %v459_v37  ;;  %909 = vmatprep.subr.bf16.mxu0 %v1016_v39  ;;  %v440_v55 = vshll.u32 %v998_v49, 16  ;;  %968 = vmatprep.subr.bf16.mxu1 %v1016_v39  ;;  %v468_v57 = vshll.u32 %v999_v52, 16  ;;  %v1002_v3 = vld [vmem:[%s1081_s27 + $0x20] sm:$0x1f]  }
  0x1a   : > { %v301_v53 = vrot.slane %v299_v48, 1  ;;  %v466_v62 = vshrl.u32 %v999_v52, 16  ;;  %v278_v0 = vshll.u32 %v1000_v58, 16  ;;  %v276_v5 = vshrl.u32 %v1000_v58, 16  ;;  %v1003_v12 = vld [vmem:[%s1081_s27 + $0x40] sm:$0x1f]  }
  0x1b   : > { %v274_v56 = vor.u32 %v273_v46, %v269_v40  ;;  %v442_v61 = vrot.slane %v440_v55, 1  ;;  %910 = vmatpush3.bf16.msra.mxu0 %v1017_v45  ;;  %v470_v63 = vrot.slane %v468_v57, 1  ;;  %976 = vmatpush3.bf16.msra.mxu1 %v1017_v45  ;;  %v306_v7 = vshll.u32 %v1001_v1, 16  ;;  %v1004_v17 = vld [vmem:[%s1081_s27 + $0x18] sm:$0x1f]  }
  0x1c   : > { %487 = vrot.lane.b32.xlu0 %v457_v33, %s1031_s9  ;;  %325 = vrot.lane.b32.xlu1 %v295_v35, %s1031_s9  ;;  %v302_v60 = vor.u32 %v301_v53, %v297_v47  ;;  %v280_v6 = vrot.slane %v278_v0, 1  ;;  %v304_v10 = vshrl.u32 %v1001_v1, 16  ;;  %v447_v11 = vshll.u32 %v1002_v3, 16  ;;  %v1005_v19 = vld [vmem:[%s1081_s27 + $0x38] sm:$0x1f]  }
  0x1d   : > { %911 = vmatprep.subr.bf16.mxu0 %v1018_v50  ;;  %969 = vmatprep.subr.bf16.mxu1 %v1018_v50  ;;  %v443_v4 = vor.u32 %v442_v61, %v438_v54  ;;  %v471_v9 = vor.u32 %v470_v63, %v466_v62  ;;  %v308_v13 = vrot.slane %v306_v7, 1  ;;  %v445_v14 = vshrl.u32 %v1002_v3, 16  ;;  %v847_v31 = vld [vmem:[%s1081_s27 + $0x8] sm:$0xf]  ;;  %v188_v32 = vld [vmem:[%s1081_s27] sm:$0xf] }
  0x1e   : > { %v449_v15 = vrot.slane %v447_v11, 1  ;;  %v475_v16 = vshll.u32 %v1003_v12, 16  ;;  %v281_v18 = vor.u32 %v280_v6, %v276_v5  ;;  %v473_v21 = vshrl.u32 %v1003_v12, 16  ;;  %359 = vst.msk [vmem:[#allocation2 + $0x8] sm:$0xf] %vm196_vm0, %v847_v31 }
  0x1f   : > { %912 = vmatpush3.bf16.msra.mxu0 %v1019_v59  ;;  %977 = vmatpush3.bf16.msra.mxu1 %v1019_v59  ;;  %v309_v20 = vor.u32 %v308_v13, %v304_v10  ;;  %v285_v23 = vshll.u32 %v1004_v17, 16  ;;  %v313_v24 = vshll.u32 %v1005_v19, 16  ;;  %v283_v25 = vshrl.u32 %v1004_v17, 16  ;;  %197 = vst.msk [vmem:[#allocation2] sm:$0xf] %vm196_vm0, %v188_v32 }
  0x20   : > { %481 = vrot.lane.b32.xlu0 %v436_v43, %s1031_s9  ;;  %489 = vrot.lane.b32.xlu1 %v464_v51, %s1031_s9  ;;  %v477_v22 = vrot.slane %v475_v16, 1  ;;  %v311_v26 = vshrl.u32 %v1005_v19, 16  ;;  %v450_v27 = vor.u32 %v449_v15, %v445_v14  ;;  %v851_v34 = vld [vmem:[%s1081_s27 + $0x28] sm:$0xf]  ;;  %v192_v35 = vld [vmem:[%s1081_s27 + $0x20] sm:$0xf] }
  0x21   : > { %913 = vmatprep.subr.bf16.mxu0 %v1020_v2  ;;  %970 = vmatprep.subr.bf16.mxu1 %v1020_v2  ;;  %v287_v28 = vrot.slane %v285_v23, 1  ;;  %v315_v29 = vrot.slane %v313_v24, 1  ;;  %363 = vst.msk [vmem:[#allocation2 + $0x48] sm:$0xf] %vm196_vm0, %v851_v34  ;;  %201 = vst.msk [vmem:[#allocation2 + $0x40] sm:$0xf] %vm196_vm0, %v192_v35 }
  0x22   : > { %v478_v30 = vor.u32 %v477_v22, %v473_v21  ;;  %v848_v37 = vld [vmem:[%s1081_s27 + $0x10] sm:$0xf]  ;;  %v189_v39 = vld [vmem:[%s1081_s27 + $0x8] sm:$0xf]  ;;  %v849_v41 = vld [vmem:[%s1081_s27 + $0x18] sm:$0xf] }
  0x23   : > { %914 = vmatpush3.bf16.msra.mxu0 %v1021_v8  ;;  %978 = vmatpush3.bf16.msra.mxu1 %v1021_v8  ;;  %v288_v33 = vor.u32 %v287_v28, %v283_v25  ;;  %v316_v36 = vor.u32 %v315_v29, %v311_v26  ;;  %v852_v38 = vld [vmem:[%s1081_s27 + $0x30] sm:$0xf]  ;;  %360 = vst.msk [vmem:[#allocation2 + $0x18] sm:$0xf] %vm196_vm0, %v848_v37  ;;  %198 = vst.msk [vmem:[#allocation2 + $0x10] sm:$0xf] %vm196_vm0, %v189_v39 }
  0x24   : > { %319 = vrot.lane.b32.xlu0 %v274_v56, %s1031_s9  ;;  %327 = vrot.lane.b32.xlu1 %v302_v60, %s1031_s9  ;;  %364 = vst.msk [vmem:[#allocation2 + $0x58] sm:$0xf] %vm196_vm0, %v852_v38  ;;  %v193_v40 = vld [vmem:[%s1081_s27 + $0x28] sm:$0xf]  ;;  %v853_v42 = vld [vmem:[%s1081_s27 + $0x38] sm:$0xf] }
  0x25   : > { %202 = vst.msk [vmem:[#allocation2 + $0x50] sm:$0xf] %vm196_vm0, %v193_v40  ;;  %361 = vst.msk [vmem:[#allocation2 + $0x28] sm:$0xf] %vm196_vm0, %v849_v41  ;;  %v190_v43 = vld [vmem:[%s1081_s27 + $0x10] sm:$0xf] }
  0x26   : > { %365 = vst.msk [vmem:[#allocation2 + $0x68] sm:$0xf] %vm196_vm0, %v853_v42  ;;  %v194_v44 = vld [vmem:[%s1081_s27 + $0x30] sm:$0xf]  ;;  %v850_v45 = vld [vmem:[%s1081_s27 + $0x20] sm:$0xf] }
  0x27   : > { %199 = vst.msk [vmem:[#allocation2 + $0x20] sm:$0xf] %vm196_vm0, %v190_v43  ;;  %203 = vst.msk [vmem:[#allocation2 + $0x60] sm:$0xf] %vm196_vm0, %v194_v44  ;;  %v854_v46 = vld [vmem:[%s1081_s27 + $0x40] sm:$0xf] }
  0x28   : > { %483 = vrot.lane.b32.xlu0 %v443_v4, %s1031_s9  ;;  %491 = vrot.lane.b32.xlu1 %v471_v9, %s1031_s9  ;;  %362 = vst.msk [vmem:[#allocation2 + $0x38] sm:$0xf] %vm196_vm0, %v850_v45  ;;  %v191_v47 = vld [vmem:[%s1081_s27 + $0x18] sm:$0xf]  ;;  %366 = vst.msk [vmem:[#allocation2 + $0x78] sm:$0xf] %vm196_vm0, %v854_v46 }
  0x29   : > { %v195_v48 = vld [vmem:[%s1081_s27 + $0x38] sm:$0xf]  ;;  %200 = vst.msk [vmem:[#allocation2 + $0x30] sm:$0xf] %vm196_vm0, %v191_v47 }
  0x2a   : > { %204 = vst.msk [vmem:[#allocation2 + $0x70] sm:$0xf] %vm196_vm0, %v195_v48 }
  0x2c   : > { %321 = vrot.lane.b32.xlu0 %v281_v18, %s1031_s9  ;;  %329 = vrot.lane.b32.xlu1 %v309_v20, %s1031_s9  ;;  %v1199_v18 = vld [vmem:[%s1236_s2] ss:$0 sm:$0xff] }
  0x30   : > { %485 = vrot.lane.b32.xlu0 %v450_v27, %s1031_s9  ;;  %493 = vrot.lane.b32.xlu1 %v478_v30, %s1031_s9 }
  0x34   : > { %323 = vrot.lane.b32.xlu0 %v288_v33, %s1031_s9  ;;  %331 = vrot.lane.b32.xlu1 %v316_v36, %s1031_s9 }
  0x8a   : > { %v480_v49 = vpop.permute.xlu0 %479  ;;  %v318_v50 = vpop.permute.xlu1 %317 }
  0x8b   : > { %503 = vst.msk [vmem:[#allocation2 + $0x8] sm:$0xf] %vm341_vm1, %v480_v49  ;;  %342 = vst.msk [vmem:[#allocation2] sm:$0xf] %vm341_vm1, %v318_v50 }
  0x8e   : > { %v488_v51 = vpop.permute.xlu0 %487  ;;  %v326_v52 = vpop.permute.xlu1 %325 }
  0x8f   : > { %507 = vst.msk [vmem:[#allocation2 + $0x48] sm:$0xf] %vm341_vm1, %v488_v51  ;;  %346 = vst.msk [vmem:[#allocation2 + $0x40] sm:$0xf] %vm341_vm1, %v326_v52 }
  0x92   : > { %v482_v53 = vpop.permute.xlu0 %481  ;;  %v512_v54 = vld [vmem:[#allocation2 + $0x8] sm:$0xff]  ;;  %v490_v55 = vpop.permute.xlu1 %489  ;;  %v511_v56 = vld [vmem:[#allocation2] sm:$0xff] }
  0x93   : > { %504 = vst.msk [vmem:[#allocation2 + $0x18] sm:$0xf] %vm341_vm1, %v482_v53  ;;  %694 = vmatprep.mubr.bf16.mxu0 %v512_v54  ;;  %508 = vst.msk [vmem:[#allocation2 + $0x58] sm:$0xf] %vm341_vm1, %v490_v55 }
  0x94   : > { %695 = vmatmul.mubr.bf16.vlgmr.msra.gmra.mrb[0].mxu0 %v511_v56 }
  0x96   : > { %v320_v57 = vpop.permute.xlu0 %319  ;;  %v520_v58 = vld [vmem:[#allocation2 + $0x48] sm:$0xff]  ;;  %v328_v59 = vpop.permute.xlu1 %327  ;;  %v519_v60 = vld [vmem:[#allocation2 + $0x40] sm:$0xff] }
  0x97   : > { %343 = vst.msk [vmem:[#allocation2 + $0x10] sm:$0xf] %vm341_vm1, %v320_v57  ;;  %722 = vmatprep.mubr.bf16.mxu1 %v520_v58  ;;  %347 = vst.msk [vmem:[#allocation2 + $0x50] sm:$0xf] %vm341_vm1, %v328_v59 }
  0x98   : > { %723 = vmatmul.mubr.bf16.vlgmr.msra.gmra.mrb[0].mxu1 %v519_v60 }
  0x9a   : > { %v484_v61 = vpop.permute.xlu0 %483  ;;  %v514_v62 = vld [vmem:[#allocation2 + $0x18] sm:$0xff]  ;;  %v492_v63 = vpop.permute.xlu1 %491 }
  0x9b   : > { %505 = vst.msk [vmem:[#allocation2 + $0x28] sm:$0xf] %vm341_vm1, %v484_v61  ;;  %701 = vmatprep.mubr.bf16.mxu0 %v514_v62  ;;  %v522_v0 = vld [vmem:[#allocation2 + $0x58] sm:$0xff]  ;;  %509 = vst.msk [vmem:[#allocation2 + $0x68] sm:$0xf] %vm341_vm1, %v492_v63 }
  0x9c   : > { %729 = vmatprep.mubr.bf16.mxu1 %v522_v0 }
  0x9e   : > { %v322_v1 = vpop.permute.xlu0 %321  ;;  %v513_v2 = vld [vmem:[#allocation2 + $0x10] sm:$0xff]  ;;  %v330_v3 = vpop.permute.xlu1 %329 }
  0x9f   : > { %344 = vst.msk [vmem:[#allocation2 + $0x20] sm:$0xf] %vm341_vm1, %v322_v1  ;;  %702 = vmatmul.mubr.bf16.gmra.mrb[4].mxu0 %v513_v2  ;;  %v521_v4 = vld [vmem:[#allocation2 + $0x50] sm:$0xff]  ;;  %348 = vst.msk [vmem:[#allocation2 + $0x60] sm:$0xf] %vm341_vm1, %v330_v3 }
  0xa0   : > { %730 = vmatmul.mubr.bf16.gmra.mrb[4].mxu1 %v521_v4 }
  0xa2   : > { %v486_v5 = vpop.permute.xlu0 %485  ;;  %v516_v6 = vld [vmem:[#allocation2 + $0x28] sm:$0xff]  ;;  %v494_v7 = vpop.permute.xlu1 %493 }
  0xa3   : > { %506 = vst.msk [vmem:[#allocation2 + $0x38] sm:$0xf] %vm341_vm1, %v486_v5  ;;  %708 = vmatprep.mubr.bf16.mxu0 %v516_v6  ;;  %v524_v8 = vld [vmem:[#allocation2 + $0x68] sm:$0xff]  ;;  %510 = vst.msk [vmem:[#allocation2 + $0x78] sm:$0xf] %vm341_vm1, %v494_v7 }
  0xa4   : > { %736 = vmatprep.mubr.bf16.mxu1 %v524_v8 }
  0xa6   : > { %v324_v9 = vpop.permute.xlu0 %323  ;;  %v515_v10 = vld [vmem:[#allocation2 + $0x20] sm:$0xff]  ;;  %v332_v11 = vpop.permute.xlu1 %331 }
  0xa7   : > { %345 = vst.msk [vmem:[#allocation2 + $0x30] sm:$0xf] %vm341_vm1, %v324_v9  ;;  %709 = vmatmul.mubr.bf16.gmra.mrb[8].mxu0 %v515_v10  ;;  %v523_v12 = vld [vmem:[#allocation2 + $0x60] sm:$0xff]  ;;  %349 = vst.msk [vmem:[#allocation2 + $0x70] sm:$0xf] %vm341_vm1, %v332_v11 }
  0xa8   : > { %737 = vmatmul.mubr.bf16.gmra.mrb[8].mxu1 %v523_v12 }
  0xaa   : > { %v518_v13 = vld [vmem:[#allocation2 + $0x38] sm:$0xff] }
  0xab   : > { %715 = vmatprep.mubr.bf16.mxu0 %v518_v13  ;;  %v526_v14 = vld [vmem:[#allocation2 + $0x78] sm:$0xff] }
  0xac   : > { %743 = vmatprep.mubr.bf16.mxu1 %v526_v14 }
  0xae   : > { %v517_v15 = vld [vmem:[#allocation2 + $0x30] sm:$0xff] }
  0xaf   : > { %716 = vmatmul.mubr.bf16.gmra.mrb[12].mxu0 %v517_v15  ;;  %v525_v16 = vld [vmem:[#allocation2 + $0x70] sm:$0xff] }
  0xb0   : > { %744 = vmatmul.mubr.bf16.gmra.mrb[12].mxu1 %v525_v16 }
 0x167   : > { %v915_v17 = vpop.f32.mrb[0].mxu0 }
 0x168   : > { %v916_v19 = vpop.f32.mrb[1].mxu0 }
 0x169   : > { %v917_v20 = vadd.f32 %v916_v19, %v915_v17  ;;  %v918_v21 = vpop.f32.mrb[2].mxu0 }
 0x16a   : > { %v919_v22 = vpop.f32.mrb[3].mxu0 }
 0x16b   : > { %v697_v23 = vadd.f32 %v917_v20, %v1199_v18  ;;  %v939_v24 = vpop.f32.mrb[0].mxu1 }
 0x16c   : > { %v940_v25 = vpop.f32.mrb[1].mxu1 }
 0x16d   : > { %v751_v26 = vmax.f32 %v697_v23, 0.0  ;;  %v941_v27 = vadd.f32 %v940_v25, %v939_v24  ;;  %v942_v28 = vpop.f32.mrb[2].mxu1 }
 0x16e   : > { %v943_v29 = vpop.f32.mrb[3].mxu1 }
 0x16f   : > { %v759_v30 = vpack.c.bf16 %v751_v26, %v751_v26  ;;  %v725_v31 = vadd.f32 %v941_v27, %v1199_v18 }
 0x171   : > { %768 = vst.msk [vmem:[%s1206_s4] sm:$0xf] %vm767_vm2, %v759_v30  ;;  %v755_v32 = vmax.f32 %v725_v31, 0.0 }
 0x172   : > { %v921_v33 = vpop.f32.mrb[4].mxu0 }
 0x173   : > { %v763_v34 = vpack.c.bf16 %v755_v32, %v755_v32  ;;  %v922_v35 = vpop.f32.mrb[5].mxu0  ;;  %v945_v36 = vpop.f32.mrb[4].mxu1 }
 0x174   : > { %v923_v37 = vadd.f32 %v922_v35, %v921_v33  ;;  %v924_v38 = vpop.f32.mrb[6].mxu0  ;;  %v946_v39 = vpop.f32.mrb[5].mxu1 }
 0x175   : > { %772 = vst.msk [vmem:[%s1206_s4 + $0x10] sm:$0xf] %vm767_vm2, %v763_v34  ;;  %v947_v40 = vadd.f32 %v946_v39, %v945_v36  ;;  %v925_v41 = vpop.f32.mrb[7].mxu0  ;;  %v948_v42 = vpop.f32.mrb[6].mxu1 }
 0x176   : > { %v704_v43 = vadd.f32 %v923_v37, %v1199_v18  ;;  %v949_v44 = vpop.f32.mrb[7].mxu1 }
 0x177   : > { %v732_v45 = vadd.f32 %v947_v40, %v1199_v18 }
 0x178   : > { %v752_v46 = vmax.f32 %v704_v43, 0.0 }
 0x179   : > { %v756_v47 = vmax.f32 %v732_v45, 0.0 }
 0x17a   : > { %v760_v48 = vpack.c.bf16 %v752_v46, %v752_v46  ;;  %v927_v49 = vpop.f32.mrb[8].mxu0 }
 0x17b   : > { %v764_v50 = vpack.c.bf16 %v756_v47, %v756_v47  ;;  %v928_v51 = vpop.f32.mrb[9].mxu0  ;;  %v951_v52 = vpop.f32.mrb[8].mxu1 }
 0x17c   : > { %769 = vst.msk [vmem:[%s1206_s4 + $0x4] sm:$0xf] %vm767_vm2, %v760_v48  ;;  %v929_v53 = vadd.f32 %v928_v51, %v927_v49  ;;  %v930_v54 = vpop.f32.mrb[10].mxu0  ;;  %v952_v55 = vpop.f32.mrb[9].mxu1 }
 0x17d   : > { %773 = vst.msk [vmem:[%s1206_s4 + $0x14] sm:$0xf] %vm767_vm2, %v764_v50  ;;  %v953_v56 = vadd.f32 %v952_v55, %v951_v52  ;;  %v931_v57 = vpop.f32.mrb[11].mxu0  ;;  %v954_v58 = vpop.f32.mrb[10].mxu1 }
 0x17e   : > { %v711_v59 = vadd.f32 %v929_v53, %v1199_v18  ;;  %v955_v60 = vpop.f32.mrb[11].mxu1 }
 0x17f   : > { %v739_v61 = vadd.f32 %v953_v56, %v1199_v18 }
 0x180   : > { %v753_v62 = vmax.f32 %v711_v59, 0.0 }
 0x181   : > { %v757_v63 = vmax.f32 %v739_v61, 0.0 }
 0x182   : > { %v761_v0 = vpack.c.bf16 %v753_v62, %v753_v62  ;;  %v933_v1 = vpop.f32.mrb[12].mxu0 }
 0x183   : > { %v765_v2 = vpack.c.bf16 %v757_v63, %v757_v63  ;;  %v934_v3 = vpop.f32.mrb[13].mxu0  ;;  %v957_v4 = vpop.f32.mrb[12].mxu1 }
 0x184   : > { %770 = vst.msk [vmem:[%s1206_s4 + $0x8] sm:$0xf] %vm767_vm2, %v761_v0  ;;  %v935_v5 = vadd.f32 %v934_v3, %v933_v1  ;;  %v936_v6 = vpop.f32.mrb[14].mxu0  ;;  %v958_v7 = vpop.f32.mrb[13].mxu1 }
 0x185   : > { %774 = vst.msk [vmem:[%s1206_s4 + $0x18] sm:$0xf] %vm767_vm2, %v765_v2  ;;  %v959_v8 = vadd.f32 %v958_v7, %v957_v4  ;;  %v937_v9 = vpop.f32.mrb[15].mxu0  ;;  %v960_v10 = vpop.f32.mrb[14].mxu1 }
 0x186   : > { %v718_v11 = vadd.f32 %v935_v5, %v1199_v18  ;;  %v961_v12 = vpop.f32.mrb[15].mxu1 }
 0x187   : > { %v746_v13 = vadd.f32 %v959_v8, %v1199_v18 }
 0x188   : > { %v754_v14 = vmax.f32 %v718_v11, 0.0 }
 0x189   : > { %v758_v15 = vmax.f32 %v746_v13, 0.0 }
 0x18a   : > { %v762_v16 = vpack.c.bf16 %v754_v14, %v754_v14 }
 0x18b   : > { %v766_v17 = vpack.c.bf16 %v758_v15, %v758_v15 }
 0x18c   : > { %771 = vst.msk [vmem:[%s1206_s4 + $0xc] sm:$0xf] %vm767_vm2, %v762_v16 }
 0x18d   : > { %775 = vst.msk [vmem:[%s1206_s4 + $0x1c] sm:$0xf] %vm767_vm2, %v766_v17 }
 0x18e PF: > { %s13_s12 = sadd.s32 1, %s1028_s12  }
 0x18f   : > { %p10_p4 = scmp.ge.s32.totalorder %s13_s12, 4  }
 0x191   :  { %12 = sbr.rel (!%p10_p4) target bundleno = 1 (0x1), region = 63 }

// kernel: cnn_dqn_forward.5
= control target key start
LH: loop header
LB: loop body
LE: loop exit
PB: predicated region body
PF: predicated region fallthrough
CT: control target
= control target key end

     0   :  { %v753_v1 = vmov 0   ;;  %vm146_vm0 = vcmask 523264   ;;  %v41_v50 = vlaneseq  ;;  %s943_s1 = inlined_call_operand.vmem [shape: bf16[64,512], index: 1, kind: input, shape index: {}]   ;;  %s944_s0 = inlined_call_operand.vmem [shape: bf16[16,64], index: 0, kind: input, shape index: {}]   ;;  %s945_s3 = inlined_call_operand.vmem [shape: bf16[512,128], index: 3, kind: input, shape index: {}]   ;;  %s946_s2 = inlined_call_operand.vmem [shape: f32[1,512], index: 2, kind: input, shape index: {}]   ;;  %s947_s4 = inlined_call_operand.vmem [shape: f32[1,128], index: 4, kind: input, shape index: {}]   ;;  %s948_s5 = inlined_call_operand.vmem [shape: f32[16,128], index: 5, kind: output, shape index: {}]  }
   0x1   :  { %v696_v0 = vld [vmem:[%s943_s1 + $0x4] ss:$16 sps:$4 sm:$0xff]   ;;  %182 = vmatprep.mubr.bf16.mxu0 %v753_v1  ;;  %225 = vmatprep.mubr.bf16.mxu1 %v753_v1  ;;  %v698_v2 = vld [vmem:[%s943_s1 + $0xc] ss:$16 sps:$4 sm:$0xff]   ;;  %v700_v3 = vld [vmem:[%s943_s1] ss:$16 sps:$4 sm:$0xff]  }
   0x2   :  { %150 = vmatprep.subr.bf16.mxu0 %v696_v0  ;;  %v701_v4 = vld [vmem:[%s943_s1 + $0x8] ss:$16 sps:$4 sm:$0xff]   ;;  %193 = vmatprep.subr.bf16.mxu1 %v698_v2  ;;  %v702_v5 = vld [vmem:[%s943_s1 + $0x24] ss:$16 sps:$4 sm:$0xff]   ;;  %v704_v6 = vld [vmem:[%s943_s1 + $0x2c] ss:$16 sps:$4 sm:$0xff]  }
   0x3   :  { %151 = vmatpush1.bf16.msra.mxu0 %v700_v3  ;;  %194 = vmatpush1.bf16.msra.mxu1 %v701_v4  ;;  %v706_v7 = vld [vmem:[%s943_s1 + $0x20] ss:$16 sps:$4 sm:$0xff]   ;;  %v707_v8 = vld [vmem:[%s943_s1 + $0x28] ss:$16 sps:$4 sm:$0xff]   ;;  %v708_v9 = vld [vmem:[%s943_s1 + $0x44] ss:$16 sps:$4 sm:$0xff]  }
   0x4   :  { %152 = vmatprep.subr.bf16.mxu0 %v702_v5  ;;  %195 = vmatprep.subr.bf16.mxu1 %v704_v6  ;;  %v710_v10 = vld [vmem:[%s943_s1 + $0x4c] ss:$16 sps:$4 sm:$0xff]   ;;  %v712_v11 = vld [vmem:[%s943_s1 + $0x40] ss:$16 sps:$4 sm:$0xff]   ;;  %v713_v12 = vld [vmem:[%s943_s1 + $0x48] ss:$16 sps:$4 sm:$0xff]  }
   0x5   :  { %v714_v13 = vld [vmem:[%s943_s1 + $0x64] ss:$16 sps:$4 sm:$0xff]   ;;  %v716_v14 = vld [vmem:[%s943_s1 + $0x6c] ss:$16 sps:$4 sm:$0xff]   ;;  %v718_v15 = vld [vmem:[%s943_s1 + $0x60] ss:$16 sps:$4 sm:$0xff]  }
   0x6   :  { %v719_v16 = vld [vmem:[%s943_s1 + $0x68] ss:$16 sps:$4 sm:$0xff]   ;;  %v721_v17 = vld [vmem:[%s945_s3 + $0x40] sm:$0xff]   ;;  %v729_v26 = vld [vmem:[%s945_s3 + $0x50] sm:$0xff]   ;;  %v42_v51 = vshrl.u32 %v41_v50, 7 }
   0x7   :  { %153 = vmatpush1.bf16.msra.mxu0 %v706_v7  ;;  %196 = vmatpush1.bf16.msra.mxu1 %v707_v8  ;;  %v720_v18 = vld [vmem:[%s944_s0] sm:$0xff]   ;;  %v725_v22 = vld [vmem:[%s945_s3 + $0x48] sm:$0xff]   ;;  %v730_v27 = vld [vmem:[%s945_s3 + $0xd0] sm:$0xff]  }
   0x8   :  { %154 = vmatprep.subr.bf16.mxu0 %v708_v9  ;;  %197 = vmatprep.subr.bf16.mxu1 %v710_v10  ;;  %v722_v19 = vld [vmem:[%s945_s3 + $0xc0] sm:$0xff]   ;;  %v726_v23 = vld [vmem:[%s945_s3 + $0xc8] sm:$0xff]   ;;  %v731_v28 = vld [vmem:[%s945_s3 + $0x10] sm:$0xff]   ;;  %v43_v52 = vsub.s32 0, %v42_v51  ;;  %v51_v53 = vsub.s32 2, %v42_v51  ;;  %v47_v55 = vsub.s32 1, %v42_v51 }
   0x9   :  { %v723_v20 = vld [vmem:[%s945_s3] sm:$0xff]   ;;  %v727_v24 = vld [vmem:[%s945_s3 + $0x8] sm:$0xff]   ;;  %v732_v29 = vld [vmem:[%s945_s3 + $0x90] sm:$0xff]   ;;  %v55_v56 = vsub.s32 3, %v42_v51 }
   0xa   :  { %v724_v21 = vld [vmem:[%s945_s3 + $0x80] sm:$0xff]   ;;  %v728_v25 = vld [vmem:[%s945_s3 + $0x88] sm:$0xff]   ;;  %v733_v30 = vld [vmem:[%s945_s3 + $0x58] sm:$0xff]  }
   0xb   :  { %155 = vmatpush1.bf16.msra.mxu0 %v712_v11  ;;  %198 = vmatpush1.bf16.msra.mxu1 %v713_v12  ;;  %v734_v31 = vld [vmem:[%s945_s3 + $0xd8] sm:$0xff]   ;;  %v737_v34 = vld [vmem:[%s945_s3 + $0x60] sm:$0xff]   ;;  %v741_v38 = vld [vmem:[%s945_s3 + $0x68] sm:$0xff]  }
   0xc   :  { %156 = vmatprep.subr.bf16.mxu0 %v714_v13  ;;  %199 = vmatprep.subr.bf16.mxu1 %v716_v14  ;;  %v735_v32 = vld [vmem:[%s945_s3 + $0x18] sm:$0xff]   ;;  %v738_v35 = vld [vmem:[%s945_s3 + $0xe0] sm:$0xff]   ;;  %v742_v39 = vld [vmem:[%s945_s3 + $0xe8] sm:$0xff]  }
   0xd   :  { %v736_v33 = vld [vmem:[%s945_s3 + $0x98] sm:$0xff]   ;;  %v739_v36 = vld [vmem:[%s945_s3 + $0x20] sm:$0xff]   ;;  %v743_v40 = vld [vmem:[%s945_s3 + $0x28] sm:$0xff]  }
   0xe   :  { %v740_v37 = vld [vmem:[%s945_s3 + $0xa0] sm:$0xff]   ;;  %v744_v41 = vld [vmem:[%s945_s3 + $0xa8] sm:$0xff]   ;;  %v745_v42 = vld [vmem:[%s945_s3 + $0x70] sm:$0xff]  }
   0xf   :  { %157 = vmatpush1.bf16.msra.mxu0 %v718_v15  ;;  %200 = vmatpush1.bf16.msra.mxu1 %v719_v16  ;;  %v746_v43 = vld [vmem:[%s945_s3 + $0xf0] sm:$0xff]   ;;  %v749_v46 = vld [vmem:[%s945_s3 + $0x78] sm:$0xff]   ;;  %v39_v54 = vld [vmem:[%s946_s2] sm:$0xf] }
  0x10   :  { %651 = vmatprep.subr.bf16.mxu0 %v721_v17  ;;  %673 = vmatprep.subr.bf16.mxu1 %v722_v19  ;;  %v747_v44 = vld [vmem:[%s945_s3 + $0x30] sm:$0xff]   ;;  %v750_v47 = vld [vmem:[%s945_s3 + $0xf8] sm:$0xff]   ;;  %v44_v57 = vrot.slane %v39_v54, %v43_v52  ;;  %v52_v58 = vrot.slane %v39_v54, %v51_v53  ;;  %v48_v59 = vrot.slane %v39_v54, %v47_v55 }
  0x11   :  { %v748_v45 = vld [vmem:[%s945_s3 + $0xb0] sm:$0xff]   ;;  %v751_v48 = vld [vmem:[%s945_s3 + $0x38] sm:$0xff]   ;;  %v56_v60 = vrot.slane %v39_v54, %v55_v56 }
  0x12   :  { %616 = vmatmul.mubr.msk.bf16.vlgmr.msra.gmra.mrb[0].mxu0 %vm146_vm0, %v720_v18  ;;  %617 = vmatmul.mubr.msk.bf16.vlgmr.msra.gmra.mrb[0].mxu1 %vm146_vm0, %v720_v18  ;;  %v752_v49 = vld [vmem:[%s945_s3 + $0xb8] sm:$0xff]  }
  0x13   :  { %652 = vmatpush3.bf16.msra.mxu0 %v723_v20  ;;  %674 = vmatpush3.bf16.msra.mxu1 %v724_v21 }
  0x14   :  { %653 = vmatprep.subr.bf16.mxu0 %v725_v22  ;;  %675 = vmatprep.subr.bf16.mxu1 %v726_v23 }
  0x17   :  { %654 = vmatpush3.bf16.msra.mxu0 %v727_v24  ;;  %676 = vmatpush3.bf16.msra.mxu1 %v728_v25 }
  0x18   :  { %655 = vmatprep.subr.bf16.mxu0 %v729_v26  ;;  %677 = vmatprep.subr.bf16.mxu1 %v730_v27  ;;  %v618_v27 = vld [vmem:[%s947_s4] ss:$0 sm:$0xff] }
  0x1b   :  { %656 = vmatpush3.bf16.msra.mxu0 %v731_v28  ;;  %678 = vmatpush3.bf16.msra.mxu1 %v732_v29 }
  0x1c   :  { %657 = vmatprep.subr.bf16.mxu0 %v733_v30  ;;  %679 = vmatprep.subr.bf16.mxu1 %v734_v31 }
  0x1f   :  { %658 = vmatpush3.bf16.msra.mxu0 %v735_v32  ;;  %680 = vmatpush3.bf16.msra.mxu1 %v736_v33 }
  0x20   :  { %659 = vmatprep.subr.bf16.mxu0 %v737_v34  ;;  %681 = vmatprep.subr.bf16.mxu1 %v738_v35 }
  0x23   :  { %660 = vmatpush3.bf16.msra.mxu0 %v739_v36  ;;  %682 = vmatpush3.bf16.msra.mxu1 %v740_v37 }
  0x24   :  { %661 = vmatprep.subr.bf16.mxu0 %v741_v38  ;;  %683 = vmatprep.subr.bf16.mxu1 %v742_v39 }
  0x27   :  { %662 = vmatpush3.bf16.msra.mxu0 %v743_v40  ;;  %684 = vmatpush3.bf16.msra.mxu1 %v744_v41 }
  0x28   :  { %663 = vmatprep.subr.bf16.mxu0 %v745_v42  ;;  %685 = vmatprep.subr.bf16.mxu1 %v746_v43 }
  0x2b   :  { %664 = vmatpush3.bf16.msra.mxu0 %v747_v44  ;;  %686 = vmatpush3.bf16.msra.mxu1 %v748_v45 }
  0x2c   :  { %665 = vmatprep.subr.bf16.mxu0 %v749_v46  ;;  %687 = vmatprep.subr.bf16.mxu1 %v750_v47 }
  0x2f   :  { %666 = vmatpush3.bf16.msra.mxu0 %v751_v48  ;;  %688 = vmatpush3.bf16.msra.mxu1 %v752_v49 }
  0xe5   :  { %v184_v61 = vpop.f32.mrb[0].mxu0  ;;  %v227_v62 = vpop.f32.mrb[0].mxu1 }
  0xe6   :  { %v185_v63 = vadd.f32 %v184_v61, %v44_v57  ;;  %v228_v0 = vadd.f32 %v227_v62, %v52_v58  ;;  %v186_v1 = vpop.f32.mrb[1].mxu0  ;;  %v229_v2 = vpop.f32.mrb[1].mxu1 }
  0xe7   :  { %v187_v3 = vadd.f32 %v186_v1, %v48_v59  ;;  %v230_v4 = vadd.f32 %v229_v2, %v56_v60  ;;  %v188_v5 = vpop.f32.mrb[2].mxu0  ;;  %v231_v6 = vpop.f32.mrb[2].mxu1 }
  0xe8   :  { %v238_v7 = vmax.f32 %v228_v0, 0.0  ;;  %v189_v8 = vadd.f32 %v188_v5, %v44_v57  ;;  %v232_v9 = vadd.f32 %v231_v6, %v52_v58  ;;  %v190_v10 = vpop.f32.mrb[3].mxu0  ;;  %v233_v11 = vpop.f32.mrb[3].mxu1  ;;  %v236_v15 = vmax.f32 %v185_v63, 0.0 }
  0xe9   :  { %v239_v12 = vmax.f32 %v230_v4, 0.0  ;;  %v191_v13 = vadd.f32 %v190_v10, %v48_v59  ;;  %v234_v14 = vadd.f32 %v233_v11, %v56_v60  ;;  %v237_v18 = vmax.f32 %v187_v3, 0.0 }
  0xea   :  { %v240_v16 = vmax.f32 %v189_v8, 0.0  ;;  %v242_v17 = vmax.f32 %v232_v9, 0.0 }
  0xeb   :  { %v241_v19 = vmax.f32 %v191_v13, 0.0  ;;  %v243_v20 = vmax.f32 %v234_v14, 0.0 }
  0xec   :  { %v244_v21 = vpack.c.bf16 %v240_v16, %v236_v15  ;;  %v246_v22 = vpack.c.bf16 %v242_v17, %v238_v7 }
  0xed   :  { %v245_v23 = vpack.c.bf16 %v241_v19, %v237_v18  ;;  %v247_v24 = vpack.c.bf16 %v243_v20, %v239_v12 }
  0xef   :  { %543 = vmatprep.mubr.bf16.mxu0 %v245_v23  ;;  %584 = vmatprep.mubr.bf16.mxu1 %v247_v24 }
  0xf0   :  { %544 = vmatmul.mubr.bf16.vlgmr.msra.gmra.mrb[4].mxu0 %v244_v21  ;;  %585 = vmatmul.mubr.bf16.vlgmr.msra.gmra.mrb[4].mxu1 %v246_v22 }
 0x1c3   :  { %v667_v25 = vpop.f32.mrb[4].mxu0  ;;  %v689_v26 = vpop.f32.mrb[4].mxu1 }
 0x1c4   :  { %v668_v28 = vpop.f32.mrb[5].mxu0  ;;  %v690_v29 = vpop.f32.mrb[5].mxu1 }
 0x1c5   :  { %v669_v30 = vadd.f32 %v668_v28, %v667_v25  ;;  %v691_v31 = vadd.f32 %v690_v29, %v689_v26  ;;  %v670_v32 = vpop.f32.mrb[6].mxu0  ;;  %v692_v33 = vpop.f32.mrb[6].mxu1 }
 0x1c6   :  { %v671_v34 = vpop.f32.mrb[7].mxu0  ;;  %v693_v35 = vpop.f32.mrb[7].mxu1 }
 0x1c7   :  { %v546_v36 = vadd.f32 %v669_v30, %v618_v27  ;;  %v672_v37 = vadd.f32 %v671_v34, %v670_v32  ;;  %v694_v38 = vadd.f32 %v693_v35, %v692_v33 }
 0x1c9   :  { %v587_v39 = vadd.f32 %v691_v31, %v546_v36  ;;  %v549_v40 = vadd.f32 %v672_v37, %v618_v27 }
 0x1cb   :  { %593 = vst [vmem:[%s948_s5] sm:$0xff] %v587_v39  ;;  %v590_v41 = vadd.f32 %v694_v38, %v549_v40 }
 0x1cd   :  { %594 = vst [vmem:[%s948_s5 + $0x8] sm:$0xff] %v590_v41 }

// kernel: cnn_dqn_forward.4
= control target key start
LH: loop header
LB: loop body
LE: loop exit
PB: predicated region body
PF: predicated region fallthrough
CT: control target
= control target key end

     0   :  { %s1740_s18 = smov 0   ;;  %s2086_s0 = inlined_call_operand.vmem [shape: bf16[2,4,4,128], index: 0, kind: input, shape index: {}]   ;;  %s2087_s1 = inlined_call_operand.vmem [shape: bf16[512,64], index: 1, kind: input, shape index: {}]   ;;  %s2088_s2 = inlined_call_operand.vmem [shape: f32[1,64], index: 2, kind: input, shape index: {}]   ;;  %s2089_s3 = inlined_call_operand.vmem [shape: bf16[576,64], index: 3, kind: input, shape index: {}]   ;;  %s2090_s4 = inlined_call_operand.vmem [shape: f32[1,64], index: 4, kind: input, shape index: {}]   ;;  %s2091_s5 = inlined_call_operand.vmem [shape: bf16[2,1,1,64], index: 5, kind: output, shape index: {}]  }
   0x1 LB: > { %s1389_s19 = sadd.s32 4294967295, %s1704_s18   ;;  %p1393_p0 = scmp.ge.s32.totalorder %s1704_s18, 1  ;;  %s1704_s18 = sphi %s1740_s18, %s15_s18  }
   0x2   : > { %p187_p1 = scmp.lt.s32.totalorder %s1704_s18, 3 }
   0x4   : > { %p188_p2 = pnand %p1393_p0, %p187_p1 }
   0x5   : > { %v1630_v0 = vld [vmem:[%s2087_s1 + $0x40] sm:$0xff] (!%p188_p2)   ;;  %v1706_v3 = vmov (!%p188_p2), 0   ;;  %v1634_v5 = vld [vmem:[%s2087_s1 + $0x48] sm:$0xff] (!%p188_p2)   ;;  %v1638_v9 = vld [vmem:[%s2087_s1 + $0x50] sm:$0xff] (!%p188_p2)   ;;  %p213_p3 = scmp.lt.s32.totalorder (!%p188_p2), %s1389_s19, 1  ;;  %vm237_vm0 = vcmask (!%p188_p2), 1041408  }
   0x6   : > { %191 = sbr.rel (%p188_p2) target bundleno = 643 (0x283), region = 40  ;;  %v1631_v1 = vld [vmem:[%s2087_s1 + $0xc0] sm:$0xff] (!%p188_p2)   ;;  %1489 = vmatprep.subr.bf16.mxu0 (!%p188_p2), %v1630_v0  ;;  %223 = vst [vmem:[#allocation2 + $0x8] sm:$0xff] (!%p188_p2), %v1706_v3  ;;  %222 = vst [vmem:[#allocation2] sm:$0xff] (!%p188_p2), %v1706_v3  ;;  %v1635_v6 = vld [vmem:[%s2087_s1 + $0xc8] sm:$0xff] (!%p188_p2)   ;;  %vm786_vm3 = vcmask (!%p188_p2), 523264  }
   0x7   : > { %v1632_v2 = vld [vmem:[%s2087_s1] sm:$0xff] (!%p188_p2)   ;;  %224 = vst [vmem:[#allocation2 + $0x10] sm:$0xff] (!%p188_p2), %v1706_v3  ;;  %225 = vst [vmem:[#allocation2 + $0x18] sm:$0xff] (!%p188_p2), %v1706_v3  ;;  %1523 = vmatprep.subr.bf16.mxu1 (!%p188_p2), %v1631_v1  ;;  %v1636_v7 = vld [vmem:[%s2087_s1 + $0x8] sm:$0xff] (!%p188_p2)   ;;  %vm238_vm1 = vsmask.f32 (!%p188_p2), 1280 }
   0x8   : > { %226 = vst [vmem:[#allocation2 + $0x20] sm:$0xff] (!%p188_p2), %v1706_v3  ;;  %227 = vst [vmem:[#allocation2 + $0x28] sm:$0xff] (!%p188_p2), %v1706_v3  ;;  %v1633_v4 = vld [vmem:[%s2087_s1 + $0x80] sm:$0xff] (!%p188_p2)   ;;  %1490 = vmatpush3.bf16.msra.mxu0 (!%p188_p2), %v1632_v2  ;;  %v1637_v8 = vld [vmem:[%s2087_s1 + $0x88] sm:$0xff] (!%p188_p2)   ;;  %vm771_vm4 = vcmask (!%p188_p2), 517120   ;;  %vm789_vm6 = vcmask (!%p188_p2), 516096  }
   0x9   : > { %228 = vst [vmem:[#allocation2 + $0x30] sm:$0xff] (!%p188_p2), %v1706_v3  ;;  %229 = vst [vmem:[#allocation2 + $0x38] sm:$0xff] (!%p188_p2), %v1706_v3  ;;  %1524 = vmatpush3.bf16.msra.mxu1 (!%p188_p2), %v1633_v4  ;;  %1491 = vmatprep.subr.bf16.mxu0 (!%p188_p2), %v1634_v5  ;;  %v1639_v10 = vld [vmem:[%s2087_s1 + $0xd0] sm:$0xff] (!%p188_p2)   ;;  %v1642_v13 = vld [vmem:[%s2087_s1 + $0x58] sm:$0xff] (!%p188_p2)   ;;  %vm790_vm7 = vsmask.f32 (!%p188_p2), 256 }
   0xa   : > { %230 = vst [vmem:[#allocation2 + $0x40] sm:$0xff] (!%p188_p2), %v1706_v3  ;;  %231 = vst [vmem:[#allocation2 + $0x48] sm:$0xff] (!%p188_p2), %v1706_v3  ;;  %1525 = vmatprep.subr.bf16.mxu1 (!%p188_p2), %v1635_v6  ;;  %v1640_v11 = vld [vmem:[%s2087_s1 + $0x10] sm:$0xff] (!%p188_p2)   ;;  %v1643_v14 = vld [vmem:[%s2087_s1 + $0xd8] sm:$0xff] (!%p188_p2)   ;;  %s1707_s6 = smov (!%p188_p2), 64   ;;  %vm810_vm9 = vcmask (!%p188_p2), 1040896  }
   0xb   : > { %232 = vst [vmem:[#allocation2 + $0x50] sm:$0xff] (!%p188_p2), %v1706_v3  ;;  %233 = vst [vmem:[#allocation2 + $0x58] sm:$0xff] (!%p188_p2), %v1706_v3  ;;  %v1641_v12 = vld [vmem:[%s2087_s1 + $0x90] sm:$0xff] (!%p188_p2)   ;;  %v1644_v15 = vld [vmem:[%s2087_s1 + $0x18] sm:$0xff] (!%p188_p2)   ;;  %vm1709_vm11 = vmmov (!%p188_p2), 0  }
   0xc   : > { %782 = vst [vmem:[#allocation4] sm:$0xff] (!%p188_p2), %v1706_v3  ;;  %783 = vst [vmem:[#allocation4 + $0x8] sm:$0xff] (!%p188_p2), %v1706_v3  ;;  %1492 = vmatpush3.bf16.msra.mxu0 (!%p188_p2), %v1636_v7  ;;  %v1645_v16 = vld [vmem:[%s2087_s1 + $0x98] sm:$0xff] (!%p188_p2)   ;;  %v1646_v17 = vld [vmem:[%s2087_s1 + $0x60] sm:$0xff] (!%p188_p2)  }
   0xd   : > { %784 = vst [vmem:[#allocation4 + $0x10] sm:$0xff] %v1706_v3  ;;  %785 = vst [vmem:[#allocation4 + $0x18] sm:$0xff] %v1706_v3  ;;  %1526 = vmatpush3.bf16.msra.mxu1 %v1637_v8  ;;  %1493 = vmatprep.subr.bf16.mxu0 %v1638_v9  ;;  %v1647_v18 = vld [vmem:[%s2087_s1 + $0xe0] sm:$0xff]   ;;  %v1650_v21 = vld [vmem:[%s2087_s1 + $0x68] sm:$0xff]   ;;  %s2101_s19 = smov (!%p213_p3, %s1389_s19), 1 }
   0xe   : > { %1527 = vmatprep.subr.bf16.mxu1 %v1639_v10  ;;  %v1648_v19 = vld [vmem:[%s2087_s1 + $0x20] sm:$0xff]   ;;  %v1651_v22 = vld [vmem:[%s2087_s1 + $0xe8] sm:$0xff]   ;;  %v1654_v25 = vld [vmem:[%s2087_s1 + $0x70] sm:$0xff]   ;;  %s1488_s28 = sshll.u32 %s2101_s19, 3  ;;  %787 = vst.msk [vmem:[#allocation4 + $0x20] sm:$0xff] %vm786_vm3, %v1706_v3  ;;  %s220_s29 = scalar_lea.vmem %s2091_s5, %s2101_s19 }
   0xf   : > { %v1649_v20 = vld [vmem:[%s2087_s1 + $0xa0] sm:$0xff]   ;;  %v1652_v23 = vld [vmem:[%s2087_s1 + $0x28] sm:$0xff]   ;;  %v1655_v26 = vld [vmem:[%s2087_s1 + $0xf0] sm:$0xff]   ;;  %s1864_s12 = scalar_lea.vmem %s2086_s0, %s1488_s28 }
  0x10   : > { %1494 = vmatpush3.bf16.msra.mxu0 %v1640_v11  ;;  %v1653_v24 = vld [vmem:[%s2087_s1 + $0xa8] sm:$0xff]   ;;  %v1656_v27 = vld [vmem:[%s2087_s1 + $0x30] sm:$0xff]   ;;  %v1658_v29 = vld [vmem:[%s2087_s1 + $0x78] sm:$0xff]  }
  0x11   : > { %1528 = vmatpush3.bf16.msra.mxu1 %v1641_v12  ;;  %1495 = vmatprep.subr.bf16.mxu0 %v1642_v13  ;;  %v1657_v28 = vld [vmem:[%s2087_s1 + $0xb0] sm:$0xff]   ;;  %v1659_v30 = vld [vmem:[%s2087_s1 + $0xf8] sm:$0xff]   ;;  %v1396_v33 = vld.sshfl [vmem:[%s1864_s12] sm:$0x3 pattern:$0x76325410] }
  0x12   : > { %1529 = vmatprep.subr.bf16.mxu1 %v1643_v14  ;;  %v1660_v31 = vld [vmem:[%s2087_s1 + $0x38] sm:$0xff]   ;;  %vm1874_vm2 = vmand %vm237_vm0, %vm238_vm1  ;;  %v277_v35 = vshrl.u32 %v1396_v33, 16  ;;  %v279_v36 = vshll.u32 %v1396_v33, 16  ;;  %v300_v37 = vld [vmem:[#allocation2 + $0x8] sm:$0x3] }
  0x13   : > { %v1661_v32 = vld [vmem:[%s2087_s1 + $0xb8] sm:$0xff]   ;;  %v1405_v38 = vld.sshfl [vmem:[%s1864_s12 + $0x2] sm:$0x3 pattern:$0x76325410]  ;;  %vm1962_vm5 = vmand %vm771_vm4, %vm238_vm1 }
  0x14   : > { %1496 = vmatpush3.bf16.msra.mxu0 %v1644_v15  ;;  %v234_v39 = vld [vmem:[%s1864_s12] sm:$0x3]  ;;  %v281_v40 = vrot.slane %v279_v36, 1  ;;  %v350_v41 = vshrl.u32 %v1405_v38, 16  ;;  %v352_v42 = vshll.u32 %v1405_v38, 16  ;;  %v1672_v38 = vld [vmem:[%s2089_s3 + $0xc8] sm:$0xff]   ;;  %vm1982_vm8 = vmand %vm789_vm6, %vm790_vm7 }
  0x15   : > { %1530 = vmatpush3.bf16.msra.mxu1 %v1645_v16  ;;  %1497 = vmatprep.subr.bf16.mxu0 %v1646_v17  ;;  %v240_v43 = vld [vmem:[#allocation2] sm:$0x3]  ;;  %v373_v44 = vld [vmem:[#allocation2 + $0x18] sm:$0x3]  ;;  %v1399_v46 = vld [vmem:[%s1864_s12 + $0x2] sm:$0x3] }
  0x16   : > { %1531 = vmatprep.subr.bf16.mxu1 %v1647_v18  ;;  %v241_v45 = vsel %vm1874_vm2, %v234_v39, %v240_v43  ;;  %v313_v47 = vld [vmem:[#allocation2 + $0x10] sm:$0x3]  ;;  %v282_v48 = vor.u32 %v281_v40, %v277_v35  ;;  %v354_v49 = vrot.slane %v352_v42, 1  ;;  %v303_v52 = vld [vmem:[#allocation2 + $0x28] sm:$0x3]  ;;  %v1662_v33 = vld [vmem:[%s2089_s3 + $0x40] sm:$0xff]  }
  0x17   : > { %242 = vst [vmem:[#allocation2] sm:$0x3] %v241_v45  ;;  %v314_v50 = vsel %vm1874_vm2, %v1399_v46, %v313_v47  ;;  %v1406_v51 = vld.sshfl [vmem:[%s1864_s12 + $0x4] sm:$0x3 pattern:$0x76325410]  ;;  %vm2045_vm10 = vmand %vm810_vm9, %vm790_vm7 }
  0x18   : > { %1498 = vmatpush3.bf16.msra.mxu0 %v1648_v19  ;;  %315 = vst [vmem:[#allocation2 + $0x10] sm:$0x3] %v314_v50  ;;  %v357_v53 = vshrl.u32 %v1406_v51, 16  ;;  %v359_v54 = vshll.u32 %v1406_v51, 16  ;;  %v235_v55 = vld [vmem:[%s1864_s12 + $0x2] sm:$0x3]  ;;  %v301_v56 = vsel %vm1874_vm2, %v282_v48, %v300_v37  ;;  %v355_v57 = vor.u32 %v354_v49, %v350_v41 }
  0x19   : > { %1532 = vmatpush3.bf16.msra.mxu1 %v1649_v20  ;;  %1499 = vmatprep.subr.bf16.mxu0 %v1650_v21  ;;  %v243_v58 = vld [vmem:[#allocation2 + $0x20] sm:$0x3]  ;;  %v1400_v59 = vld [vmem:[%s1864_s12 + $0x4] sm:$0x3]  ;;  %v316_v60 = vld [vmem:[#allocation2 + $0x30] sm:$0x3] }
  0x1a   : > { %1533 = vmatprep.subr.bf16.mxu1 %v1651_v22  ;;  %302 = vst [vmem:[#allocation2 + $0x8] sm:$0x3] %v301_v56  ;;  %v361_v61 = vrot.slane %v359_v54, 1  ;;  %v376_v62 = vld [vmem:[#allocation2 + $0x38] sm:$0x3]  ;;  %v244_v63 = vsel %vm1874_vm2, %v235_v55, %v243_v58  ;;  %v317_v0 = vsel %vm1874_vm2, %v1400_v59, %v316_v60  ;;  %v374_v2 = vsel %vm1874_vm2, %v355_v57, %v373_v44  ;;  %v1663_v34 = vld [vmem:[%s2089_s3] sm:$0xff]  }
  0x1b   : > { %v306_v1 = vld [vmem:[#allocation2 + $0x48] sm:$0x3]  ;;  %v304_v4 = vsel %vm1874_vm2, %v355_v57, %v303_v52  ;;  %245 = vst [vmem:[#allocation2 + $0x20] sm:$0x3] %v244_v63  ;;  %318 = vst [vmem:[#allocation2 + $0x30] sm:$0x3] %v317_v0 }
  0x1c   : > { %1500 = vmatpush3.bf16.msra.mxu0 %v1652_v23  ;;  %v1407_v5 = vld.sshfl [vmem:[%s1864_s12 + $0x6] sm:$0x3 pattern:$0x76325410]  ;;  %v236_v6 = vld [vmem:[%s1864_s12 + $0x4] sm:$0x3]  ;;  %v362_v7 = vor.u32 %v361_v61, %v357_v53 }
  0x1d   : > { %1534 = vmatpush3.bf16.msra.mxu1 %v1653_v24  ;;  %1501 = vmatprep.subr.bf16.mxu0 %v1654_v25  ;;  %375 = vst [vmem:[#allocation2 + $0x18] sm:$0x3] %v374_v2  ;;  %305 = vst [vmem:[#allocation2 + $0x28] sm:$0x3] %v304_v4  ;;  %v364_v8 = vshrl.u32 %v1407_v5, 16  ;;  %v366_v9 = vshll.u32 %v1407_v5, 16 }
  0x1e   : > { %1535 = vmatprep.subr.bf16.mxu1 %v1655_v26  ;;  %v246_v10 = vld [vmem:[#allocation2 + $0x40] sm:$0x3]  ;;  %v1401_v11 = vld [vmem:[%s1864_s12 + $0x6] sm:$0x3]  ;;  %v379_v12 = vld [vmem:[#allocation2 + $0x58] sm:$0x3]  ;;  %v377_v15 = vsel %vm1874_vm2, %v362_v7, %v376_v62  ;;  %v307_v16 = vsel %vm1874_vm2, %v362_v7, %v306_v1 }
  0x1f   : > { %v247_v13 = vsel %vm1874_vm2, %v236_v6, %v246_v10  ;;  %v319_v14 = vld [vmem:[#allocation2 + $0x50] sm:$0x3]  ;;  %v368_v17 = vrot.slane %v366_v9, 1  ;;  %v382_v19 = vld [vmem:[#allocation2] sm:$0xff]  ;;  %378 = vst [vmem:[#allocation2 + $0x38] sm:$0x3] %v377_v15 }
  0x20   : > { %1502 = vmatpush3.bf16.msra.mxu0 %v1656_v27  ;;  %248 = vst [vmem:[#allocation2 + $0x40] sm:$0x3] %v247_v13  ;;  %v320_v18 = vsel %vm1874_vm2, %v1401_v11, %v319_v14  ;;  %308 = vst [vmem:[#allocation2 + $0x48] sm:$0x3] %v307_v16  ;;  %v384_v22 = vld [vmem:[#allocation2 + $0x10] sm:$0xff]  ;;  %v1664_v35 = vld [vmem:[%s2089_s3 + $0x48] sm:$0xff]  }
  0x21   : > { %1536 = vmatpush3.bf16.msra.mxu1 %v1657_v28  ;;  %1503 = vmatprep.subr.bf16.mxu0 %v1658_v29  ;;  %321 = vst [vmem:[#allocation2 + $0x50] sm:$0x3] %v320_v18  ;;  %v369_v20 = vor.u32 %v368_v17, %v364_v8  ;;  %v383_v21 = vld [vmem:[#allocation2 + $0x8] sm:$0xff]  ;;  %v1668_v36 = vld [vmem:[%s2089_s3 + $0xc0] sm:$0xff]   ;;  %v1666_v39 = vld [vmem:[%s2089_s3 + $0x50] sm:$0xff]  }
  0x22   : > { %1537 = vmatprep.subr.bf16.mxu1 %v1659_v30  ;;  %689 = vmatprep.mubr.bf16.mxu0 %v383_v21  ;;  %v386_v27 = vld [vmem:[#allocation2 + $0x20] sm:$0xff]  ;;  %v388_v29 = vld [vmem:[#allocation2 + $0x30] sm:$0xff]  ;;  %v1665_v37 = vld [vmem:[%s2089_s3 + $0x8] sm:$0xff]  }
  0x23   : > { %v380_v23 = vsel %vm1874_vm2, %v369_v20, %v379_v12  ;;  %v1670_v3 = vld [vmem:[%s2089_s3 + $0x80] sm:$0xff]   ;;  %v1674_v40 = vld [vmem:[%s2089_s3 + $0x88] sm:$0xff]   ;;  %v1676_v41 = vld [vmem:[%s2089_s3 + $0xd0] sm:$0xff]  }
  0x24   : > { %1504 = vmatpush3.bf16.msra.mxu0 %v1660_v31  ;;  %v385_v24 = vld [vmem:[#allocation2 + $0x18] sm:$0xff]  ;;  %v387_v25 = vld [vmem:[#allocation2 + $0x28] sm:$0xff]  ;;  %381 = vst [vmem:[#allocation2 + $0x58] sm:$0x3] %v380_v23  ;;  %v1667_v42 = vld [vmem:[%s2089_s3 + $0x10] sm:$0xff]  }
  0x25   : > { %1538 = vmatpush3.bf16.msra.mxu1 %v1661_v32  ;;  %743 = vmatprep.mubr.bf16.mxu1 %v385_v24  ;;  %v1669_v43 = vld [vmem:[%s2089_s3 + $0x58] sm:$0xff]   ;;  %v1673_v45 = vld [vmem:[%s2089_s3 + $0x60] sm:$0xff]   ;;  %v1677_v16 = vld [vmem:[%s2089_s3 + $0x68] sm:$0xff]  }
  0x26   : > { %v389_v26 = vld [vmem:[#allocation2 + $0x38] sm:$0xff]  ;;  %1557 = vmatprep.subr.bf16.mxu0 %v1662_v33  ;;  %1579 = vmatprep.subr.bf16.mxu1 %v1668_v36  ;;  %v1675_v46 = vld [vmem:[%s2089_s3 + $0x20] sm:$0xff]   ;;  %v1678_v17 = vld [vmem:[%s2089_s3 + $0x90] sm:$0xff]  }
  0x27   : > { %690 = vmatmul.mubr.bf16.vlgmr.msra.gmra.mrb[0].mxu0 %v382_v19  ;;  %v391_v28 = vld [vmem:[#allocation2 + $0x48] sm:$0xff]  ;;  %v390_v31 = vld [vmem:[#allocation2 + $0x40] sm:$0xff]  ;;  %v1671_v44 = vld [vmem:[%s2089_s3 + $0x18] sm:$0xff]  }
  0x28   : > { %696 = vmatprep.mubr.bf16.mxu0 %v387_v25  ;;  %744 = vmatmul.mubr.bf16.vlgmr.msra.gmra.mrb[0].mxu1 %v384_v22  ;;  %v392_v32 = vld [vmem:[#allocation2 + $0x50] sm:$0xff]  ;;  %v1408_v48 = vld [vmem:[%s2088_s2] ss:$0 sm:$0xff]  ;;  %v776_v18 = vld [vmem:[#allocation3 + $0x2] sm:$0x3] }
  0x29   : > { %750 = vmatprep.mubr.bf16.mxu1 %v389_v26  ;;  %1558 = vmatpush3.bf16.msra.mxu0 %v1663_v34  ;;  %v773_v63 = vld [vmem:[#allocation3] sm:$0x3]  ;;  %v1679_v20 = vld [vmem:[%s2089_s3 + $0x28] sm:$0xff]   ;;  %v1680_v21 = vld [vmem:[%s2089_s3 + $0xd8] sm:$0xff]  }
  0x2a   : > { %1559 = vmatprep.subr.bf16.mxu0 %v1664_v35  ;;  %1580 = vmatpush3.bf16.msra.mxu1 %v1670_v3  ;;  %v826_v33 = vld [vmem:[#allocation4 + $0x8] sm:$0x1]  ;;  %v792_v34 = vld [vmem:[#allocation4] sm:$0x1]  ;;  %v1681_v35 = vld [vmem:[%s2089_s3 + $0x70] sm:$0xff]  }
  0x2b   : > { %v393_v30 = vld [vmem:[#allocation2 + $0x58] sm:$0xff]  ;;  %1581 = vmatprep.subr.bf16.mxu1 %v1672_v38  ;;  %v1692_v62 = vld [vmem:[%s2089_s3 + $0xb0] sm:$0xff]  }
  0x2d   : > { %1560 = vmatpush3.bf16.msra.mxu0 %v1665_v37 }
  0x2e   : > { %1561 = vmatprep.subr.bf16.mxu0 %v1666_v39  ;;  %1582 = vmatpush3.bf16.msra.mxu1 %v1674_v40  ;;  %v1682_v40 = vld [vmem:[%s2089_s3 + $0x98] sm:$0xff]  }
  0x2f   : > { %697 = vmatmul.mubr.bf16.gmra.mrb[4].mxu0 %v386_v27  ;;  %1583 = vmatprep.subr.bf16.mxu1 %v1676_v41  ;;  %v1683_v41 = vld [vmem:[%s2089_s3 + $0x30] sm:$0xff]  }
  0x30   : > { %703 = vmatprep.mubr.bf16.mxu0 %v391_v28  ;;  %751 = vmatmul.mubr.bf16.gmra.mrb[4].mxu1 %v388_v29 }
  0x31   : > { %757 = vmatprep.mubr.bf16.mxu1 %v393_v30  ;;  %1562 = vmatpush3.bf16.msra.mxu0 %v1667_v42 }
  0x32   : > { %1563 = vmatprep.subr.bf16.mxu0 %v1669_v43  ;;  %1584 = vmatpush3.bf16.msra.mxu1 %v1678_v17  ;;  %v1684_v43 = vld [vmem:[%s2089_s3 + $0xe0] sm:$0xff]  }
  0x33   : > { %1585 = vmatprep.subr.bf16.mxu1 %v1680_v21 }
  0x35   : > { %1564 = vmatpush3.bf16.msra.mxu0 %v1671_v44  ;;  %v1685_v44 = vld [vmem:[%s2089_s3 + $0x78] sm:$0xff]  }
  0x36   : > { %1565 = vmatprep.subr.bf16.mxu0 %v1673_v45  ;;  %1586 = vmatpush3.bf16.msra.mxu1 %v1682_v40  ;;  %v1448_v40 = vld [vmem:[%s2090_s4] ss:$0 sm:$0xff] }
  0x37   : > { %704 = vmatmul.mubr.bf16.gmra.mrb[8].mxu0 %v390_v31  ;;  %1587 = vmatprep.subr.bf16.mxu1 %v1684_v43 }
  0x38   : > { %758 = vmatmul.mubr.bf16.gmra.mrb[8].mxu1 %v392_v32 }
  0x39   : > { %1566 = vmatpush3.bf16.msra.mxu0 %v1675_v46 }
  0x3a   : > { %1567 = vmatprep.subr.bf16.mxu0 %v1677_v16 }
  0x3d   : > { %1568 = vmatpush3.bf16.msra.mxu0 %v1679_v20 }
  0x3e   : > { %1569 = vmatprep.subr.bf16.mxu0 %v1681_v35 }
  0x41   : > { %1570 = vmatpush3.bf16.msra.mxu0 %v1683_v41 }
  0x42   : > { %1571 = vmatprep.subr.bf16.mxu0 %v1685_v44 }
  0xfa   : > { %v1505_v47 = vpop.f32.mrb[0].mxu0 }
  0xfb   : > { %v1506_v49 = vpop.f32.mrb[1].mxu0  ;;  %v1539_v50 = vpop.f32.mrb[0].mxu1 }
  0xfc   : > { %v1507_v51 = vadd.f32 %v1506_v49, %v1505_v47  ;;  %v1508_v52 = vpop.f32.mrb[2].mxu0  ;;  %v1540_v53 = vpop.f32.mrb[1].mxu1  ;;  %v1686_v47 = vld [vmem:[%s2089_s3 + $0xa0] sm:$0xff]  }
  0xfd   : > { %v1509_v54 = vpop.f32.mrb[3].mxu0  ;;  %v1541_v56 = vadd.f32 %v1540_v53, %v1539_v50  ;;  %v1542_v57 = vpop.f32.mrb[2].mxu1  ;;  %v779_v49 = vld [vmem:[#allocation3 + $0x4] sm:$0x3]  ;;  %v1688_v53 = vld [vmem:[%s2089_s3 + $0xe8] sm:$0xff]   ;;  %1588 = vmatpush3.bf16.msra.mxu1 %v1686_v47 }
  0xfe   : > { %v692_v55 = vadd.f32 %v1507_v51, %v1408_v48  ;;  %v1543_v58 = vpop.f32.mrb[3].mxu1  ;;  %v858_v51 = vld [vmem:[#allocation4 + $0x10] sm:$0x1]  ;;  %1589 = vmatprep.subr.bf16.mxu1 %v1688_v53 }
  0xff   : > { %v1708_v58 = vmov 0.0  }
 0x100   : > { %v746_v59 = vadd.f32 %v1541_v56, %v692_v55  ;;  %v1689_v56 = vld [vmem:[%s2089_s3 + $0xa8] sm:$0xff]  }
 0x101   : > { %1590 = vmatpush3.bf16.msra.mxu1 %v1689_v56 }
 0x102   : > { %v765_v60 = vmax.f32 %v746_v59, 0.0  ;;  %v1511_v61 = vpop.f32.mrb[4].mxu0 }
 0x103   : > { %v1512_v0 = vpop.f32.mrb[5].mxu0  ;;  %v1545_v2 = vpop.f32.mrb[4].mxu1 }
 0x104   : > { %v768_v1 = vpack.c.bf16 %v765_v60, %v765_v60  ;;  %v1513_v4 = vadd.f32 %v1512_v0, %v1511_v61  ;;  %v1514_v5 = vpop.f32.mrb[6].mxu0  ;;  %v1546_v6 = vpop.f32.mrb[5].mxu1  ;;  %v1691_v61 = vld [vmem:[%s2089_s3 + $0xf0] sm:$0xff]   ;;  %v1694_v0 = vld [vmem:[%s2089_s3 + $0xf8] sm:$0xff]  }
 0x105   : > { %v1515_v7 = vpop.f32.mrb[7].mxu0  ;;  %v1547_v10 = vadd.f32 %v1546_v6, %v1545_v2  ;;  %v1548_v11 = vpop.f32.mrb[6].mxu1  ;;  %1591 = vmatprep.subr.bf16.mxu1 %v1691_v61  ;;  %v911_v2 = vld [vmem:[#allocation4 + $0x20] sm:$0x1] }
 0x106   : > { %v774_v8 = vsel %vm1962_vm5, %v768_v1, %v773_v63  ;;  %v699_v9 = vadd.f32 %v1513_v4, %v1408_v48  ;;  %v1549_v12 = vpop.f32.mrb[7].mxu1  ;;  %v879_v63 = vld [vmem:[#allocation4 + $0x18] sm:$0x1]  ;;  %1592 = vmatpush3.bf16.msra.mxu1 %v1692_v62 }
 0x107   : > { %775 = vst [vmem:[#allocation3] sm:$0x3] %v774_v8  ;;  %v1695_v1 = vld [vmem:[%s2089_s3 + $0xb8] sm:$0xff]   ;;  %1593 = vmatprep.subr.bf16.mxu1 %v1694_v0 }
 0x108   : > { %v753_v13 = vadd.f32 %v1547_v10, %v699_v9 }
 0x10a   : > { %v766_v14 = vmax.f32 %v753_v13, 0.0  ;;  %v1517_v15 = vpop.f32.mrb[8].mxu0  ;;  %1594 = vmatpush3.bf16.msra.mxu1 %v1695_v1 }
 0x10b   : > { %v1518_v19 = vpop.f32.mrb[9].mxu0  ;;  %v1551_v23 = vpop.f32.mrb[8].mxu1 }
 0x10c   : > { %v769_v22 = vpack.c.bf16 %v766_v14, %v766_v14  ;;  %v1519_v24 = vadd.f32 %v1518_v19, %v1517_v15  ;;  %v1520_v25 = vpop.f32.mrb[10].mxu0  ;;  %v1552_v26 = vpop.f32.mrb[9].mxu1 }
 0x10d   : > { %v1521_v27 = vpop.f32.mrb[11].mxu0  ;;  %v1553_v31 = vadd.f32 %v1552_v26, %v1551_v23  ;;  %v1554_v32 = vpop.f32.mrb[10].mxu1 }
 0x10e   : > { %v777_v29 = vsel %vm1962_vm5, %v769_v22, %v776_v18  ;;  %v706_v30 = vadd.f32 %v1519_v24, %v1408_v48  ;;  %v1555_v36 = vpop.f32.mrb[11].mxu1  ;;  %v1442_v3 = vld.sshfl [vmem:[#allocation3] sm:$0x2 pattern:$0x76325410]  ;;  %v1687_v48 = vld [vmem:[%s2089_s3 + $0x38] sm:$0xff]  }
 0x10f   : > { %778 = vst [vmem:[#allocation3 + $0x2] sm:$0x3] %v777_v29  ;;  %v824_v38 = vrot.slane %v1442_v3, 1  ;;  %v788_v39 = vld [vmem:[#allocation3] sm:$0x1]  ;;  %1572 = vmatpush3.bf16.msra.mxu0 %v1687_v48  ;;  %v1696_v32 = vld [vmem:[%s2089_s3 + $0x110] sm:$0xff]  }
 0x110   : > { %v760_v37 = vadd.f32 %v1553_v31, %v706_v30  ;;  %v793_v42 = vsel %vm1982_vm8, %v788_v39, %v792_v34  ;;  %v1441_v52 = vld.sshfl [vmem:[#allocation3] sm:$0x1 pattern:$0x76325410]  ;;  %1606 = vmatprep.subr.bf16.mxu0 %v1708_v58  ;;  %v1693_v30 = vld [vmem:[%s2089_s3 + $0x108] sm:$0xff]   ;;  %v1697_v34 = vld [vmem:[%s2089_s3 + $0x118] sm:$0xff]  }
 0x111   : > { %v827_v46 = vsel %vm1982_vm8, %v824_v38, %v826_v33  ;;  %794 = vst [vmem:[#allocation4] sm:$0x1] %v793_v42  ;;  %v805_v59 = vshrl.u32 %v1441_v52, 16  ;;  %v1690_v24 = vld [vmem:[%s2089_s3 + $0x100] sm:$0xff]  }
 0x112   : > { %v767_v45 = vmax.f32 %v760_v37, 0.0  ;;  %828 = vst [vmem:[#allocation4 + $0x8] sm:$0x1] %v827_v46 }
 0x114   : > { %v770_v50 = vpack.c.bf16 %v767_v45, %v767_v45 }
 0x116   : > { %v780_v54 = vsel %vm1962_vm5, %v770_v50, %v779_v49  ;;  %v1443_v55 = vld.sshfl [vmem:[#allocation3 + $0x2] sm:$0x1 pattern:$0x76325410] }
 0x117   : > { %781 = vst [vmem:[#allocation3 + $0x4] sm:$0x3] %v780_v54  ;;  %839 = vrot.lane.b32.xlu0 %v1443_v55, %s1707_s6  ;;  %v855_v57 = vshrl.u32 %v1443_v55, 16  ;;  %v1339_v54 = vld [vmem:[%s220_s29] sm:$0x1] }
 0x118   : > { %v1445_v9 = vld.sshfl [vmem:[#allocation3 + $0x2] sm:$0x2 pattern:$0x76325410]  ;;  %v812_v18 = vld [vmem:[#allocation4] sm:$0x1] }
 0x119   : > { %v859_v60 = vsel %vm1982_vm8, %v855_v57, %v858_v51  ;;  %v870_v12 = vrot.slane %v1445_v9, 1  ;;  %v842_v15 = vld [vmem:[#allocation4 + $0x8] sm:$0x1] }
 0x11a   : > { %860 = vst [vmem:[#allocation4 + $0x10] sm:$0x1] %v859_v60 }
 0x11b   : > { %807 = vrot.lane.b32.xlu0 %v805_v59, %s1707_s6 }
 0x11e   : > { %v1446_v4 = vld.sshfl [vmem:[#allocation3 + $0x4] sm:$0x1 pattern:$0x76325410] }
 0x11f   : > { %v878_v5 = vld [vmem:[#allocation3 + $0x4] sm:$0x1]  ;;  %v892_v6 = vshrl.u32 %v1446_v4, 16 }
 0x120   : > { %v880_v7 = vsel %vm1982_vm8, %v878_v5, %v879_v63  ;;  %v1447_v8 = vld.sshfl [vmem:[#allocation3 + $0x4] sm:$0x2 pattern:$0x76325410] }
 0x121   : > { %881 = vst [vmem:[#allocation4 + $0x18] sm:$0x1] %v880_v7  ;;  %v909_v10 = vrot.slane %v1447_v8, 1  ;;  %894 = vrot.lane.b32.xlu1 %v892_v6, %s1707_s6  ;;  %v874_v27 = vld [vmem:[#allocation4 + $0x10] sm:$0x1] }
 0x123   : > { %v912_v11 = vsel %vm1982_vm8, %v909_v10, %v911_v2 }
 0x124   : > { %913 = vst [vmem:[#allocation4 + $0x20] sm:$0x1] %v912_v11 }
 0x125   : > { %871 = vrot.lane.b32.xlu1 %v870_v12, %s1707_s6 }
 0x128   : > { %v897_v22 = vld [vmem:[#allocation4 + $0x18] sm:$0x1] }
 0x12b   : > { %v918_v35 = vld [vmem:[#allocation4 + $0x20] sm:$0xff] }
 0x189   : > { %v840_v14 = vpop.permute.xlu0 %839 }
 0x18a   : > { %v843_v16 = vsel %vm2045_vm10, %v840_v14, %v842_v15 }
 0x18b   : > { %844 = vst [vmem:[#allocation4 + $0x8] sm:$0x1] %v843_v16 }
 0x18d   : > { %v808_v17 = vpop.permute.xlu0 %807 }
 0x18e   : > { %v813_v19 = vsel %vm2045_vm10, %v808_v17, %v812_v18 }
 0x18f   : > { %814 = vst [vmem:[#allocation4] sm:$0x1] %v813_v19 }
 0x192   : > { %v915_v20 = vld [vmem:[#allocation4 + $0x8] sm:$0xff] }
 0x193   : > { %v895_v21 = vpop.permute.xlu1 %894  ;;  %1249 = vmatprep.mubr.bf16.mxu0 %v915_v20 }
 0x194   : > { %v898_v23 = vsel %vm2045_vm10, %v895_v21, %v897_v22 }
 0x195   : > { %899 = vst [vmem:[#allocation4 + $0x18] sm:$0x1] %v898_v23 }
 0x196   : > { %v914_v25 = vld [vmem:[#allocation4] sm:$0xff] }
 0x197   : > { %v872_v26 = vpop.permute.xlu1 %871  ;;  %1250 = vmatmul.mubr.bf16.vlgmr.msra.gmra.mrb[12].mxu0 %v914_v25 }
 0x198   : > { %v875_v29 = vsel %vm2045_vm10, %v872_v26, %v874_v27  ;;  %1607 = vmatpush3.bf16.msra.mxu0 %v1690_v24  ;;  %1614 = vmatprep.mubr.msk.bf16.mxu0 %vm1709_vm11, %v1708_v58 }
 0x199   : > { %876 = vst [vmem:[#allocation4 + $0x10] sm:$0x1] %v875_v29  ;;  %1608 = vmatprep.subr.bf16.mxu0 %v1708_v58 }
 0x19c   : > { %1609 = vmatpush3.bf16.msra.mxu0 %v1693_v30  ;;  %v917_v31 = vld [vmem:[#allocation4 + $0x18] sm:$0xff] }
 0x19d   : > { %1289 = vmatprep.mubr.bf16.mxu1 %v917_v31  ;;  %1610 = vmatprep.subr.bf16.mxu0 %v1708_v58 }
 0x1a0   : > { %1611 = vmatpush3.bf16.msra.mxu0 %v1696_v32  ;;  %v916_v33 = vld [vmem:[#allocation4 + $0x10] sm:$0xff] }
 0x1a1   : > { %1290 = vmatmul.mubr.bf16.vlgmr.msra.gmra.mrb[12].mxu1 %v916_v33  ;;  %1612 = vmatprep.subr.bf16.mxu0 %v1708_v58 }
 0x1a4   : > { %1613 = vmatpush3.bf16.msra.mxu0 %v1697_v34 }
 0x1a7   : > { %1615 = vmatmul.mubr.msk.bf16.vlgmr.msra.gmra.mrb[16].mxu0 %vm786_vm3, %v918_v35 }
 0x26a   : > { %v1573_v36 = vpop.f32.mrb[12].mxu0 }
 0x26b   : > { %v1574_v3 = vpop.f32.mrb[13].mxu0 }
 0x26c   : > { %v1575_v37 = vadd.f32 %v1574_v3, %v1573_v36  ;;  %v1576_v38 = vpop.f32.mrb[14].mxu0 }
 0x26d   : > { %v1577_v39 = vpop.f32.mrb[15].mxu0 }
 0x26e   : > { %v1252_v43 = vadd.f32 %v1575_v37, %v1448_v40 }
 0x274   : > { %v1595_v41 = vpop.f32.mrb[12].mxu1 }
 0x275   : > { %v1596_v42 = vpop.f32.mrb[13].mxu1 }
 0x276   : > { %v1597_v44 = vadd.f32 %v1596_v42, %v1595_v41  ;;  %v1598_v45 = vpop.f32.mrb[14].mxu1 }
 0x277   : > { %v1599_v46 = vpop.f32.mrb[15].mxu1 }
 0x278   : > { %v1292_v47 = vadd.f32 %v1597_v44, %v1252_v43 }
 0x27a   : > { %v1331_v48 = vpop.f32.mrb[16].mxu0 }
 0x27b   : > { %v1332_v49 = vadd.f32 %v1331_v48, %v1292_v47  ;;  %v1616_v50 = vpop.f32.mrb[17].mxu0 }
 0x27c   : > { %v1334_v51 = vpop.f32.mrb[18].mxu0 }
 0x27d   : > { %v1337_v52 = vmax.f32 %v1332_v49, 0.0  ;;  %v1617_v53 = vpop.f32.mrb[19].mxu0 }
 0x27f   : > { %v1338_v55 = vpack.c.bf16 %v1337_v52, %v1337_v52 }
 0x281   : > { %v1340_v56 = vsel %vm1982_vm8, %v1338_v55, %v1339_v54 }
 0x282   : > { %1341 = vst [vmem:[%s220_s29] sm:$0x1] %v1340_v56 }
 0x283 PF: > { %s15_s18 = sadd.s32 1, %s1704_s18  }
 0x284   : > { %p12_p4 = scmp.ge.s32.totalorder %s15_s18, 4  }
 0x286   :  { %14 = sbr.rel (!%p12_p4) target bundleno = 1 (0x1), region = 73 }

</bundles_post_ra>
